<compile_context>
chip_gen: v6e
topology: v6e:2x2x1
jax: 0.10.0
libtpu: 0.0.40
codegen_flags: <defaults>
</compile_context>

<pallas_src>
import functools

import jax
import jax.numpy as jnp
from jax import lax
from jax.experimental import pallas as pl
from jax.experimental.pallas import tpu as pltpu

# Above this class count the one-hot-matmul select (O(C^2 * rows) MXU flops)
# stops being free; fall back to the VPU iota/compare select.
_MXU_SELECT_MAX_CLASSES = 256


def _focal_modulate(mean_ce, gamma):
    """(1 - exp(-ce))**gamma * ce with gamma a *static* Python number."""
    gamma = float(gamma)
    if gamma == 0.0:
        return mean_ce                      # (1 - p)**0 == 1
    p = jnp.exp(-mean_ce)
    base = 1.0 - p
    if gamma.is_integer() and 0 <= int(gamma) <= 8:
        w = jnp.ones_like(mean_ce)          # unrolled integer power (no pow lowering)
        for _ in range(int(gamma)):
            w = w * base
    else:
        w = jnp.power(base, jnp.float32(gamma))
    return w * mean_ce


def _focal_ce_kernel(logits_ref, target_ref, out_ref, acc_ref, *,
                     tile_n, n_classes, n_rows, tiles_per_slice, gamma,
                     mxu_select, finalize):
    s = pl.program_id(0)            # slice ("core") index
    t = pl.program_id(1)            # tile index within the slice
    g = s * tiles_per_slice + t     # global tile index (un-clamped)

    @pl.when(t == 0)
    def _init():
        acc_ref[...] = jnp.zeros_like(acc_ref)

    x = logits_ref[...]                                        # (T, C) native dtype
    # Rows past the true batch (ragged last tile / duplicated tail tile of the
    # megacore split) hold undefined block padding -> zero them so NaN/Inf
    # padding can never poison the matmuls or sums (NaN-safe masking).
    rows = g * tile_n + lax.broadcasted_iota(jnp.int32, x.shape, 0)
    valid = rows < n_rows
    x = jnp.where(valid, x, 0)

    # ---- logsumexp over the class (lane) axis, f32 accumulation -------------
    xf = x.astype(jnp.float32)
    m = jnp.max(xf, axis=-1, keepdims=True)                    # (T, 1)
    p = jnp.exp(xf - m)                                        # (T, C) f32 (EUP)
    ones = jnp.ones((n_classes, 1), jnp.float32)
    sum_exp = jnp.dot(p, ones,                                 # class reduce on the MXU
                      precision=lax.Precision.HIGHEST,
                      preferred_element_type=jnp.float32)      # (T, 1)
    lse = m + jnp.log(sum_exp)
    lse = jnp.where(valid[:, :1], lse, 0.0)
    lse_sum = jnp.sum(lse)

    # ---- sum over rows of the logit at the target class ---------------------
    if mxu_select:
        # Lane-dense targets: tgt[i, j] = target[g*tile_n + i*W + j].
        tgt = target_ref[0]                                    # (8, W) int32
        w = tile_n // 8
        kio = lax.broadcasted_iota(jnp.int32, (n_classes, w), 0)
        mm_prec = (lax.Precision.HIGHEST if x.dtype == jnp.float32
                   else lax.Precision.DEFAULT)
        zcc = jnp.zeros((n_classes, n_classes), jnp.float32)
        for i in range(8):                                     # static unroll
            a_i = (kio == tgt[i:i + 1, :]).astype(x.dtype)     # (C, W) one-hot cols
            x_i = x[i * w:(i + 1) * w, :]                      # (W, C) matching rows
            zcc = zcc + jnp.dot(a_i, x_i, precision=mm_prec,
                                preferred_element_type=jnp.float32)
        di = lax.broadcasted_iota(jnp.int32, zcc.shape, 0)
        dj = lax.broadcasted_iota(jnp.int32, zcc.shape, 1)
        sel_sum = jnp.sum(jnp.where(di == dj, zcc, 0.0))       # trace == sum_r x[r, tgt[r]]
    else:
        # Large class counts: iota/compare select with a (T, 1) target column
        # (its 128-lane VMEM padding is negligible relative to C*itemsize rows).
        tgt = target_ref[...]                                  # (T, 1) int32
        cls = lax.broadcasted_iota(jnp.int32, x.shape, 1)
        sel = jnp.where(cls == tgt, x, 0)                      # one nonzero per row
        sel_sum = jnp.sum(jnp.sum(sel, axis=-1, keepdims=True).astype(jnp.float32))

    acc_ref[...] += lse_sum - sel_sum                          # CE sum of this tile

    @pl.when(t == tiles_per_slice - 1)
    def _finish():
        part = acc_ref[...]                                    # (1, 1) slice CE sum
        if finalize:
            mean_ce = part * (1.0 / n_rows)
            out_val = _focal_modulate(mean_ce, gamma)          # full loss in-kernel
        else:
            out_val = part                                     # per-slice partial
        out_ref[...] = jnp.broadcast_to(out_val, out_ref.shape)


def _tpu_vmem_capacity_bytes():
    try:
        return int(pltpu.get_tpu_info().vmem_capacity_bytes)
    except Exception:
        return 64 * 1024 * 1024        # conservative default (v7x per-TensorCore)


def _auto_tile_rows(n_classes, itemsize, tile_bytes):
    rows = int(tile_bytes) // max(1, n_classes * itemsize)
    if rows >= 1024:
        rows = (rows // 1024) * 1024   # keep W = tile_n/8 a multiple of 128 (lane-dense)
    else:
        rows = max(8, (rows // 8) * 8)
    return min(rows, 131072)


def focal_loss(logits, target, *, gamma=0.0, eps=1e-07, tile_rows=None):
    """Focal loss over (N, C) logits and (N,) int targets -> f32 scalar.

    Matches torch FocalLoss(weight=None, reduction='mean', gamma=gamma): the
    focal modulation is applied to the *scalar* mean cross entropy.  `gamma`
    must be a static Python number.
    """
    # TODO(synk): per-class `weight`, ignore_index and non-'mean' reductions of
    # torch.nn.CrossEntropyLoss are not implemented (module defaults used);
    # `eps` is unused in the reference forward as well.
    del eps
    n, c = logits.shape
    itemsize = jnp.dtype(logits.dtype).itemsize

    # Generation-aware sizing: ~VMEM/32 per logits tile, ~60% scoped limit.
    vmem_cap = _tpu_vmem_capacity_bytes()
    tile_bytes = min(4 * 1024 * 1024, max(1 * 1024 * 1024, vmem_cap // 32))
    vmem_limit = min(100 * 1024 * 1024, max(32 * 1024 * 1024, (vmem_cap * 6) // 10))

    if tile_rows is not None:
        tile_n = max(8, -(-int(tile_rows) // 8) * 8)
    else:
        tile_n = _auto_tile_rows(c, itemsize, tile_bytes)

    logits_in = logits
    if tile_n >= n:
        if n >= 1024:
            tile_n = (n // 1024) * 1024          # ragged tail handled in-kernel
        else:
            tile_n = -(-n // 64) * 64            # tiny batch: one zero-padded block
            if tile_n != n:
                logits_in = jnp.pad(logits, ((0, tile_n - n), (0, 0)))

    num_tiles = pl.cdiv(n, tile_n)
    # Two grid slices so the "parallel" leading axis maps onto both TensorCores
    # on v7x; a single slice finalizes fully in-kernel (no XLA epilogue).
    num_slices = 2 if num_tiles >= 4 else 1
    tiles_per_slice = pl.cdiv(num_tiles, num_slices)
    total_tiles = num_slices * tiles_per_slice

    mxu_select = c <= _MXU_SELECT_MAX_CLASSES

    # Targets: pad once to the full grid extent (cheap int32), then lay out
    # lane-dense (total_tiles, 8, W) for the MXU-select path, or as a column
    # for the large-C fallback.
    total_rows = total_tiles * tile_n
    tgt_flat = jnp.pad(target.astype(jnp.int32).reshape(-1), (0, total_rows - n))
    if mxu_select:
        tgt_in = tgt_flat.reshape(total_tiles, 8, tile_n // 8)
        tgt_spec = pl.BlockSpec(
            (1, 8, tile_n // 8),
            lambda s, t: (jnp.minimum(s * tiles_per_slice + t, num_tiles - 1), 0, 0))
    else:
        tgt_in = tgt_flat.reshape(total_rows, 1)
        tgt_spec = pl.BlockSpec(
            (tile_n, 1),
            lambda s, t: (jnp.minimum(s * tiles_per_slice + t, num_tiles - 1), 0))

    logits_spec = pl.BlockSpec(
        (tile_n, c),
        lambda s, t: (jnp.minimum(s * tiles_per_slice + t, num_tiles - 1), 0))
    out_spec = pl.BlockSpec((8, 128), lambda s, t: (s, 0))      # lane-dense per slice

    kernel = functools.partial(
        _focal_ce_kernel,
        tile_n=tile_n, n_classes=c, n_rows=n, tiles_per_slice=tiles_per_slice,
        gamma=float(gamma), mxu_select=mxu_select, finalize=(num_slices == 1))

    res = pl.pallas_call(
        kernel,
        out_shape=jax.ShapeDtypeStruct((num_slices * 8, 128), jnp.float32),
        grid_spec=pltpu.PrefetchScalarGridSpec(
            num_scalar_prefetch=0,
            grid=(num_slices, tiles_per_slice),
            in_specs=[logits_spec, tgt_spec],
            out_specs=out_spec,
            scratch_shapes=[pltpu.VMEM((1, 1), jnp.float32)],
        ),
        compiler_params=pltpu.CompilerParams(
            dimension_semantics=("parallel", "arbitrary"),
            vmem_limit_bytes=int(vmem_limit),
        ),
    )(logits_in, tgt_in)

    if num_slices == 1:
        return res[0, 0]                   # focal loss already computed in-kernel
    ce_sum = res[0, 0] + res[8, 0]         # tiny epilogue: combine the two slices
    mean_ce = ce_sum / jnp.float32(n)
    return _focal_modulate(mean_ce, gamma)


def _reference(logits, target, gamma):
    x = logits.astype(jnp.float32)
    n = x.shape[0]
    lse = jax.scipy.special.logsumexp(x, axis=-1)
    ce = jnp.mean(lse - x[jnp.arange(n), target])
    p = jnp.exp(-ce)
    return (1.0 - p) ** gamma * ce


if __name__ == "__main__":
    key = jax.random.PRNGKey(0)
    k1, k2, k3, k4, k5, k6, k7, k8 = jax.random.split(key, 8)
    gamma = 2.0

    # Case 1: tiny single-tile batch, f32 logits, MXU one-hot select path.
    n1, c1 = 8, 16
    logits1 = jax.random.normal(k1, (n1, c1), dtype=jnp.float32)
    target1 = jax.random.randint(k2, (n1,), 0, c1, dtype=jnp.int32)
    out1 = jax.block_until_ready(focal_loss(logits1, target1, gamma=gamma))
    ref1 = _reference(logits1, target1, gamma)
    assert jnp.allclose(out1, ref1, rtol=1e-4, atol=1e-6), (out1, ref1)

    # Case 1b: gamma=0 must reduce to plain mean cross entropy.
    out1b = jax.block_until_ready(focal_loss(logits1, target1, gamma=0.0))
    ref1b = _reference(logits1, target1, 0.0)
    assert jnp.allclose(out1b, ref1b, rtol=1e-4, atol=1e-6), (out1b, ref1b)

    # Case 2: bf16 logits, ragged multi-tile, single slice (in-kernel finalize).
    n2, c2 = 300, 16
    logits2 = jax.random.normal(k3, (n2, c2), dtype=jnp.bfloat16)
    target2 = jax.random.randint(k4, (n2,), 0, c2, dtype=jnp.int32)
    out2 = jax.block_until_ready(focal_loss(logits2, target2, gamma=gamma, tile_rows=128))
    ref2 = _reference(logits2, target2, gamma)
    assert jnp.allclose(out2, ref2, rtol=1e-4, atol=1e-5), (out2, ref2)

    # Case 3: enough tiles for the 2-slice megacore split; odd tile count also
    # exercises the clamped duplicate tail tile and the tiny JAX epilogue.
    n3, c3 = 1100, 16
    logits3 = jax.random.normal(k5, (n3, c3), dtype=jnp.float32)
    target3 = jax.random.randint(k6, (n3,), 0, c3, dtype=jnp.int32)
    out3 = jax.block_until_ready(focal_loss(logits3, target3, gamma=gamma, tile_rows=128))
    ref3 = _reference(logits3, target3, gamma)
    assert jnp.allclose(out3, ref3, rtol=1e-4, atol=1e-6), (out3, ref3)

    # Case 4: class count above the MXU-select threshold -> iota/compare
    # fallback with (tile, 1) target blocks (also multi-tile + split).
    n4, c4 = 520, 300
    logits4 = jax.random.normal(k7, (n4, c4), dtype=jnp.float32)
    target4 = jax.random.randint(k8, (n4,), 0, c4, dtype=jnp.int32)
    out4 = jax.block_until_ready(focal_loss(logits4, target4, gamma=gamma, tile_rows=64))
    ref4 = _reference(logits4, target4, gamma)
    assert jnp.allclose(out4, ref4, rtol=1e-4, atol=1e-6), (out4, ref4)

    print("KERNEL_OK")
</pallas_src>

<mosaic_0001>
module attributes {stable_mosaic.version = 11 : i64} {
  func.func @_focal_ce_kernel(%arg0: i32, %arg1: i32, %arg2: memref<64x16xf32, #tpu.memory_space<vmem>>, %arg3: memref<1x8x8xi32, #tpu.memory_space<vmem>>, %arg4: memref<8x128xf32, #tpu.memory_space<vmem>>, %arg5: memref<1x1xf32, #tpu.memory_space<vmem>>) attributes {dimension_semantics = [#tpu.dimension_semantics<parallel>, #tpu.dimension_semantics<arbitrary>], iteration_bounds = array<i64: 1, 1>, scalar_prefetch = 0 : i64, scratch_operands = 1 : i64, tpu.core_type = #tpu.core_type<tc>, window_params = [{transform_indices = @transform_0, window_bounds = array<i64: 64, 16>}, {transform_indices = @transform_1, window_bounds = array<i64: 1, 8, 8>}, {transform_indices = @transform_2, window_bounds = array<i64: 8, 128>}]} {
    %c1_i32 = arith.constant 1 : i32
    %0 = arith.muli %arg0, %c1_i32 : i32
    %1 = arith.addi %0, %arg1 : i32
    %c0_i32 = arith.constant 0 : i32
    %2 = arith.cmpi eq, %arg1, %c0_i32 : i32
    %3 = arith.extui %2 : i1 to i32
    %c0_i32_0 = arith.constant 0 : i32
    %4 = arith.cmpi ne, %3, %c0_i32_0 : i32
    scf.if %4 {
      %cst_27 = arith.constant 0.000000e+00 : f32
      %116 = vector.broadcast %cst_27 : f32 to vector<1x1xf32>
      %c0_28 = arith.constant 0 : index
      %c0_29 = arith.constant 0 : index
      %117 = vector.load %arg5[%c0_28, %c0_29] : memref<1x1xf32, #tpu.memory_space<vmem>>, vector<1x1xf32>
      tpu.vector_store %arg5[%c0_28, %c0_29], %116 {strides = array<i32>} : memref<1x1xf32, #tpu.memory_space<vmem>>, vector<1x1xf32>,
    } else {
    }
    %c0 = arith.constant 0 : index
    %c0_1 = arith.constant 0 : index
    %5 = vector.load %arg2[%c0, %c0_1] : memref<64x16xf32, #tpu.memory_space<vmem>>, vector<64x16xf32>
    %c64_i32 = arith.constant 64 : i32
    %6 = arith.muli %1, %c64_i32 : i32
    %7 = tpu.iota {dimensions = array<i32: 0>} : vector<64x16xi32>
    %8 = vector.broadcast %6 : i32 to vector<64x16xi32>
    %9 = arith.addi %8, %7 : vector<64x16xi32>
    %c8_i32 = arith.constant 8 : i32
    %10 = vector.broadcast %c8_i32 : i32 to vector<64x16xi32>
    %11 = arith.cmpi slt, %9, %10 : vector<64x16xi32>
    %c0_i32_2 = arith.constant 0 : i32
    %12 = arith.sitofp %c0_i32_2 : i32 to f32
    %13 = vector.broadcast %12 : f32 to vector<64x16xf32>
    %14 = arith.select %11, %5, %13 : vector<64x16xi1>, vector<64x16xf32>
    %cst = arith.constant dense<0xFF800000> : vector<64xf32>
    %15 = vector.multi_reduction <maximumf>, %14, %cst [1] : vector<64x16xf32> to vector<64xf32>
    %16 = vector.shape_cast %15 : vector<64xf32> to vector<64x1xf32>
    %17 = vector.broadcast %16 : vector<64x1xf32> to vector<64x16xf32>
    %18 = arith.subf %14, %17 : vector<64x16xf32>
    %19 = math.exp %18 : vector<64x16xf32>
    %cst_3 = arith.constant 1.000000e+00 : f32
    %20 = vector.broadcast %cst_3 : f32 to vector<16x1xf32>
    %cst_4 = arith.constant dense<0.000000e+00> : vector<64x1xf32>
    %21 = tpu.matmul %19, %20, %cst_4 {dimension_numbers = #tpu.dot_dimension_numbers<[1], [0], [0], [1], [0, 0, 1, 1], [], []>, precision = #tpu.contract_precision<fp32>} : vector<64x16xf32>, vector<16x1xf32>, vector<64x1xf32> -> vector<64x1xf32>
    %22 = math.log %21 : vector<64x1xf32>
    %23 = arith.addf %16, %22 : vector<64x1xf32>
    %24 = vector.extract_strided_slice %11 {offsets = [0, 0], sizes = [64, 1], strides = [1, 1]} : vector<64x16xi1> to vector<64x1xi1>
    %cst_5 = arith.constant 0.000000e+00 : f32
    %25 = vector.broadcast %cst_5 : f32 to vector<64x1xf32>
    %26 = arith.select %24, %23, %25 : vector<64x1xi1>, vector<64x1xf32>
    %27 = vector.shape_cast %26 : vector<64x1xf32> to vector<1x64x1xf32>
    %cst_6 = arith.constant dense<0.000000e+00> : vector<1xf32>
    %28 = vector.multi_reduction <add>, %27, %cst_6 [1, 2] : vector<1x64x1xf32> to vector<1xf32>
    %29 = vector.shape_cast %28 : vector<1xf32> to vector<1x1x1xf32>
    %30 = vector.extract %29[0, 0, 0] : f32 from vector<1x1x1xf32>
    %c0_7 = arith.constant 0 : index
    %c0_8 = arith.constant 0 : index
    %c0_9 = arith.constant 0 : index
    %31 = vector.load %arg3[%c0_7, %c0_8, %c0_9] : memref<1x8x8xi32, #tpu.memory_space<vmem>>, vector<1x8x8xi32>
    %32 = vector.shape_cast %31 : vector<1x8x8xi32> to vector<8x8xi32>
    %33 = tpu.iota {dimensions = array<i32: 0>} : vector<16x8xi32>
    %cst_10 = arith.constant 0.000000e+00 : f32
    %34 = vector.broadcast %cst_10 : f32 to vector<16x16xf32>
    %35 = vector.extract_strided_slice %32 {offsets = [0, 0], sizes = [1, 8], strides = [1, 1]} : vector<8x8xi32> to vector<1x8xi32>
    %36 = vector.broadcast %35 : vector<1x8xi32> to vector<16x8xi32>
    %37 = arith.cmpi eq, %33, %36 : vector<16x8xi32>
    %38 = arith.extui %37 : vector<16x8xi1> to vector<16x8xi32>
    %39 = arith.sitofp %38 : vector<16x8xi32> to vector<16x8xf32>
    %40 = vector.extract_strided_slice %14 {offsets = [0, 0], sizes = [8, 16], strides = [1, 1]} : vector<64x16xf32> to vector<8x16xf32>
    %cst_11 = arith.constant dense<0.000000e+00> : vector<16x16xf32>
    %41 = tpu.matmul %39, %40, %cst_11 {dimension_numbers = #tpu.dot_dimension_numbers<[1], [0], [0], [1], [0, 0, 1, 1], [], []>, precision = #tpu.contract_precision<fp32>} : vector<16x8xf32>, vector<8x16xf32>, vector<16x16xf32> -> vector<16x16xf32>
    %42 = arith.addf %34, %41 : vector<16x16xf32>
    %43 = vector.extract_strided_slice %32 {offsets = [1, 0], sizes = [1, 8], strides = [1, 1]} : vector<8x8xi32> to vector<1x8xi32>
    %44 = vector.broadcast %43 : vector<1x8xi32> to vector<16x8xi32>
    %45 = arith.cmpi eq, %33, %44 : vector<16x8xi32>
    %46 = arith.extui %45 : vector<16x8xi1> to vector<16x8xi32>
    %47 = arith.sitofp %46 : vector<16x8xi32> to vector<16x8xf32>
    %48 = vector.extract_strided_slice %14 {offsets = [8, 0], sizes = [8, 16], strides = [1, 1]} : vector<64x16xf32> to vector<8x16xf32>
    %cst_12 = arith.constant dense<0.000000e+00> : vector<16x16xf32>
    %49 = tpu.matmul %47, %48, %cst_12 {dimension_numbers = #tpu.dot_dimension_numbers<[1], [0], [0], [1], [0, 0, 1, 1], [], []>, precision = #tpu.contract_precision<fp32>} : vector<16x8xf32>, vector<8x16xf32>, vector<16x16xf32> -> vector<16x16xf32>
    %50 = arith.addf %42, %49 : vector<16x16xf32>
    %51 = vector.extract_strided_slice %32 {offsets = [2, 0], sizes = [1, 8], strides = [1, 1]} : vector<8x8xi32> to vector<1x8xi32>
    %52 = vector.broadcast %51 : vector<1x8xi32> to vector<16x8xi32>
    %53 = arith.cmpi eq, %33, %52 : vector<16x8xi32>
    %54 = arith.extui %53 : vector<16x8xi1> to vector<16x8xi32>
    %55 = arith.sitofp %54 : vector<16x8xi32> to vector<16x8xf32>
    %56 = vector.extract_strided_slice %14 {offsets = [16, 0], sizes = [8, 16], strides = [1, 1]} : vector<64x16xf32> to vector<8x16xf32>
    %cst_13 = arith.constant dense<0.000000e+00> : vector<16x16xf32>
    %57 = tpu.matmul %55, %56, %cst_13 {dimension_numbers = #tpu.dot_dimension_numbers<[1], [0], [0], [1], [0, 0, 1, 1], [], []>, precision = #tpu.contract_precision<fp32>} : vector<16x8xf32>, vector<8x16xf32>, vector<16x16xf32> -> vector<16x16xf32>
    %58 = arith.addf %50, %57 : vector<16x16xf32>
    %59 = vector.extract_strided_slice %32 {offsets = [3, 0], sizes = [1, 8], strides = [1, 1]} : vector<8x8xi32> to vector<1x8xi32>
    %60 = vector.broadcast %59 : vector<1x8xi32> to vector<16x8xi32>
    %61 = arith.cmpi eq, %33, %60 : vector<16x8xi32>
    %62 = arith.extui %61 : vector<16x8xi1> to vector<16x8xi32>
    %63 = arith.sitofp %62 : vector<16x8xi32> to vector<16x8xf32>
    %64 = vector.extract_strided_slice %14 {offsets = [24, 0], sizes = [8, 16], strides = [1, 1]} : vector<64x16xf32> to vector<8x16xf32>
    %cst_14 = arith.constant dense<0.000000e+00> : vector<16x16xf32>
    %65 = tpu.matmul %63, %64, %cst_14 {dimension_numbers = #tpu.dot_dimension_numbers<[1], [0], [0], [1], [0, 0, 1, 1], [], []>, precision = #tpu.contract_precision<fp32>} : vector<16x8xf32>, vector<8x16xf32>, vector<16x16xf32> -> vector<16x16xf32>
    %66 = arith.addf %58, %65 : vector<16x16xf32>
    %67 = vector.extract_strided_slice %32 {offsets = [4, 0], sizes = [1, 8], strides = [1, 1]} : vector<8x8xi32> to vector<1x8xi32>
    %68 = vector.broadcast %67 : vector<1x8xi32> to vector<16x8xi32>
    %69 = arith.cmpi eq, %33, %68 : vector<16x8xi32>
    %70 = arith.extui %69 : vector<16x8xi1> to vector<16x8xi32>
    %71 = arith.sitofp %70 : vector<16x8xi32> to vector<16x8xf32>
    %72 = vector.extract_strided_slice %14 {offsets = [32, 0], sizes = [8, 16], strides = [1, 1]} : vector<64x16xf32> to vector<8x16xf32>
    %cst_15 = arith.constant dense<0.000000e+00> : vector<16x16xf32>
    %73 = tpu.matmul %71, %72, %cst_15 {dimension_numbers = #tpu.dot_dimension_numbers<[1], [0], [0], [1], [0, 0, 1, 1], [], []>, precision = #tpu.contract_precision<fp32>} : vector<16x8xf32>, vector<8x16xf32>, vector<16x16xf32> -> vector<16x16xf32>
    %74 = arith.addf %66, %73 : vector<16x16xf32>
    %75 = vector.extract_strided_slice %32 {offsets = [5, 0], sizes = [1, 8], strides = [1, 1]} : vector<8x8xi32> to vector<1x8xi32>
    %76 = vector.broadcast %75 : vector<1x8xi32> to vector<16x8xi32>
    %77 = arith.cmpi eq, %33, %76 : vector<16x8xi32>
    %78 = arith.extui %77 : vector<16x8xi1> to vector<16x8xi32>
    %79 = arith.sitofp %78 : vector<16x8xi32> to vector<16x8xf32>
    %80 = vector.extract_strided_slice %14 {offsets = [40, 0], sizes = [8, 16], strides = [1, 1]} : vector<64x16xf32> to vector<8x16xf32>
    %cst_16 = arith.constant dense<0.000000e+00> : vector<16x16xf32>
    %81 = tpu.matmul %79, %80, %cst_16 {dimension_numbers = #tpu.dot_dimension_numbers<[1], [0], [0], [1], [0, 0, 1, 1], [], []>, precision = #tpu.contract_precision<fp32>} : vector<16x8xf32>, vector<8x16xf32>, vector<16x16xf32> -> vector<16x16xf32>
    %82 = arith.addf %74, %81 : vector<16x16xf32>
    %83 = vector.extract_strided_slice %32 {offsets = [6, 0], sizes = [1, 8], strides = [1, 1]} : vector<8x8xi32> to vector<1x8xi32>
    %84 = vector.broadcast %83 : vector<1x8xi32> to vector<16x8xi32>
    %85 = arith.cmpi eq, %33, %84 : vector<16x8xi32>
    %86 = arith.extui %85 : vector<16x8xi1> to vector<16x8xi32>
    %87 = arith.sitofp %86 : vector<16x8xi32> to vector<16x8xf32>
    %88 = vector.extract_strided_slice %14 {offsets = [48, 0], sizes = [8, 16], strides = [1, 1]} : vector<64x16xf32> to vector<8x16xf32>
    %cst_17 = arith.constant dense<0.000000e+00> : vector<16x16xf32>
    %89 = tpu.matmul %87, %88, %cst_17 {dimension_numbers = #tpu.dot_dimension_numbers<[1], [0], [0], [1], [0, 0, 1, 1], [], []>, precision = #tpu.contract_precision<fp32>} : vector<16x8xf32>, vector<8x16xf32>, vector<16x16xf32> -> vector<16x16xf32>
    %90 = arith.addf %82, %89 : vector<16x16xf32>
    %91 = vector.extract_strided_slice %32 {offsets = [7, 0], sizes = [1, 8], strides = [1, 1]} : vector<8x8xi32> to vector<1x8xi32>
    %92 = vector.broadcast %91 : vector<1x8xi32> to vector<16x8xi32>
    %93 = arith.cmpi eq, %33, %92 : vector<16x8xi32>
    %94 = arith.extui %93 : vector<16x8xi1> to vector<16x8xi32>
    %95 = arith.sitofp %94 : vector<16x8xi32> to vector<16x8xf32>
    %96 = vector.extract_strided_slice %14 {offsets = [56, 0], sizes = [8, 16], strides = [1, 1]} : vector<64x16xf32> to vector<8x16xf32>
    %cst_18 = arith.constant dense<0.000000e+00> : vector<16x16xf32>
    %97 = tpu.matmul %95, %96, %cst_18 {dimension_numbers = #tpu.dot_dimension_numbers<[1], [0], [0], [1], [0, 0, 1, 1], [], []>, precision = #tpu.contract_precision<fp32>} : vector<16x8xf32>, vector<8x16xf32>, vector<16x16xf32> -> vector<16x16xf32>
    %98 = arith.addf %90, %97 : vector<16x16xf32>
    %99 = tpu.iota {dimensions = array<i32: 0>} : vector<16x16xi32>
    %100 = tpu.iota {dimensions = array<i32: 1>} : vector<16x16xi32>
    %101 = arith.cmpi eq, %99, %100 : vector<16x16xi32>
    %cst_19 = arith.constant 0.000000e+00 : f32
    %102 = vector.broadcast %cst_19 : f32 to vector<16x16xf32>
    %103 = arith.select %101, %98, %102 : vector<16x16xi1>, vector<16x16xf32>
    %104 = vector.shape_cast %103 : vector<16x16xf32> to vector<1x16x16xf32>
    %cst_20 = arith.constant dense<0.000000e+00> : vector<1xf32>
    %105 = vector.multi_reduction <add>, %104, %cst_20 [1, 2] : vector<1x16x16xf32> to vector<1xf32>
    %106 = vector.shape_cast %105 : vector<1xf32> to vector<1x1x1xf32>
    %107 = vector.extract %106[0, 0, 0] : f32 from vector<1x1x1xf32>
    %c0_21 = arith.constant 0 : index
    %c0_22 = arith.constant 0 : index
    %108 = vector.load %arg5[%c0_21, %c0_22] : memref<1x1xf32, #tpu.memory_space<vmem>>, vector<1x1xf32>
    %109 = arith.subf %30, %107 : f32
    %110 = vector.broadcast %109 : f32 to vector<1x1xf32>
    %111 = arith.addf %108, %110 : vector<1x1xf32>
    %c0_23 = arith.constant 0 : index
    %c0_24 = arith.constant 0 : index
    %112 = vector.load %arg5[%c0_23, %c0_24] : memref<1x1xf32, #tpu.memory_space<vmem>>, vector<1x1xf32>
    tpu.vector_store %arg5[%c0_23, %c0_24], %111 {strides = array<i32>} : memref<1x1xf32, #tpu.memory_space<vmem>>, vector<1x1xf32>,
    %c0_i32_25 = arith.constant 0 : i32
    %113 = arith.cmpi eq, %arg1, %c0_i32_25 : i32
    %114 = arith.extui %113 : i1 to i32
    %c0_i32_26 = arith.constant 0 : i32
    %115 = arith.cmpi ne, %114, %c0_i32_26 : i32
    scf.if %115 {
      %c0_27 = arith.constant 0 : index
      %c0_28 = arith.constant 0 : index
      %116 = vector.load %arg5[%c0_27, %c0_28] : memref<1x1xf32, #tpu.memory_space<vmem>>, vector<1x1xf32>
      %cst_29 = arith.constant 1.250000e-01 : f32
      %117 = vector.broadcast %cst_29 : f32 to vector<1x1xf32>
      %118 = arith.mulf %116, %117 : vector<1x1xf32>
      %cst_30 = arith.constant 0.000000e+00 : f32
      %119 = vector.broadcast %cst_30 : f32 to vector<1x1xf32>
      %120 = arith.subf %119, %118 : vector<1x1xf32>
      %121 = math.exp %120 : vector<1x1xf32>
      %cst_31 = arith.constant 1.000000e+00 : f32
      %122 = vector.broadcast %cst_31 : f32 to vector<1x1xf32>
      %123 = arith.subf %122, %121 : vector<1x1xf32>
      %cst_32 = arith.constant 1.000000e+00 : f32
      %124 = vector.broadcast %cst_32 : f32 to vector<1x1xf32>
      %125 = arith.mulf %124, %123 : vector<1x1xf32>
      %126 = arith.mulf %125, %123 : vector<1x1xf32>
      %127 = arith.mulf %126, %118 : vector<1x1xf32>
      %128 = vector.shape_cast %127 : vector<1x1xf32> to vector<1x1xf32>
      %129 = vector.broadcast %128 : vector<1x1xf32> to vector<8x128xf32>
      %c0_33 = arith.constant 0 : index
      %c0_34 = arith.constant 0 : index
      %130 = vector.load %arg4[%c0_33, %c0_34] : memref<8x128xf32, #tpu.memory_space<vmem>>, vector<8x128xf32>
      tpu.vector_store %arg4[%c0_33, %c0_34], %129 {strides = array<i32>} : memref<8x128xf32, #tpu.memory_space<vmem>>, vector<8x128xf32>,
    } else {
    }
    return
  }
  func.func @transform_0(%arg0: i32, %arg1: i32) -> (i32, i32) {
    %c1_i32 = arith.constant 1 : i32
    %0 = arith.muli %arg0, %c1_i32 : i32
    %1 = arith.addi %0, %arg1 : i32
    %c0_i32 = arith.constant 0 : i32
    %2 = arith.minsi %1, %c0_i32 : i32
    %c0_i32_0 = arith.constant 0 : i32
    %c0_i32_1 = arith.constant 0 : i32
    return %2, %c0_i32_0 : i32, i32
  }
  func.func @transform_1(%arg0: i32, %arg1: i32) -> (i32, i32, i32) {
    %c1_i32 = arith.constant 1 : i32
    %0 = arith.muli %arg0, %c1_i32 : i32
    %1 = arith.addi %0, %arg1 : i32
    %c0_i32 = arith.constant 0 : i32
    %2 = arith.minsi %1, %c0_i32 : i32
    %c0_i32_0 = arith.constant 0 : i32
    %c0_i32_1 = arith.constant 0 : i32
    %c0_i32_2 = arith.constant 0 : i32
    return %2, %c0_i32_0, %c0_i32_1 : i32, i32, i32
  }
  func.func @transform_2(%arg0: i32, %arg1: i32) -> (i32, i32) {
    %c0_i32 = arith.constant 0 : i32
    %c0_i32_0 = arith.constant 0 : i32
    return %arg0, %c0_i32 : i32, i32
  }
}

</mosaic_0001>

<bundles_post_ra>
// kernel: tpu_custom_call.1
= control target key start
LH: loop header
LB: loop body
LE: loop exit
PB: predicated region body
PF: predicated region fallthrough
CT: control target
= control target key end

     0   :  { %vm121_vm0 = vcmask 130048   ;;  %s6450_s0 = inlined_call_operand.vmem [shape: f32[64,16], index: 0, kind: input, shape index: {}]   ;;  %s6451_s1 = inlined_call_operand.vmem [shape: s32[1,8,8], index: 1, kind: input, shape index: {}]   ;;  %s6452_s2 = inlined_call_operand.hbm [shape: f32[8,128], index: 2, kind: output, shape index: {}]  }
   0x1   :  { %v5780_v0 = vld [vmem:[%s6450_s0] sm:$0xff] }
   0x2   :  { %7 = vsyncpa [#allocation4], 0  ;;  %v5757_v1 = vmov -inf   ;;  %v122_v3 = vsel %vm121_vm0, %v5780_v0, -inf  ;;  %v6454_v4 = vmov 0.0   ;;  %v5759_v5 = vmov 1.0  }
   0x3   :  { %v125_v2 = vsel %vm121_vm0, 0.0, %v5757_v1  ;;  %123 = vmax.xlane.f32.xlu0 %v122_v3  ;;  %5391 = vmatprep.subr.mxu1 %v6454_v4  ;;  %vm1006_vm3 = vcmask 64512   ;;  %s5761_s14 = smov [#allocation3]  }
   0x4   :  { %129 = vmax.xlane.f32.xlu1 %v125_v2  ;;  %5392 = vmatpush3.msra.mxu1 %v6454_v4  ;;  %s5090_s15 = sshll.u32 %s5761_s14, 4  ;;  %s5091_s15 = int_to_ptr.vmem [resolvable:$true] %s5090_s15 }
   0x5   :  { %5405 = vmatprep.subr.mxu1 %v6454_v4  ;;  %5375 = vmatprep.subr.mxu0 %v5759_v5  ;;  %s5735_s16 = scalar_lea.vmem %s5091_s15, 128  ;;  %p5740_p1 = scmp.lt.s32.totalorder %s5091_s15, %s5091_s15 }
   0x6   :  { %5376 = vmatpush3.msra.mxu0 %v5759_v5  ;;  %p5736_p0 = scmp.ne.s32.totalorder %s5091_s15, %s5735_s16  ;;  %p5741_p2 = scmp.lt.s32.totalorder %s5735_s16, %s5735_s16 }
   0x7   :  { %126 = vmax.xlane.f32.xlu0 %v125_v2  ;;  %5377 = vmatprep.subr.mxu0 %v5759_v5 }
   0x8   :  { %132 = vmax.xlane.f32.xlu1 %v125_v2  ;;  %5378 = vmatpush3.msra.mxu0 %v5759_v5  ;;  %p5742_p3 = por %p5741_p2, %p5740_p1 }
   0x9   :  { %5419 = vmatprep.subr.mxu0 %v5759_v5 }
   0xa   :  { %p5743_p4 = pnand %p5742_p3, %p5736_p0 }
   0xb   :  { %135 = vmax.xlane.f32.xlu0 %v125_v2 }
   0xc   :  { %138 = vmax.xlane.f32.xlu1 %v125_v2 }
   0xf   :  { %141 = vmax.xlane.f32.xlu0 %v125_v2 }
  0x10   :  { %144 = vmax.xlane.f32.xlu1 %v125_v2  ;;  %v6455_v2 = vlaneseq }
  0x8c   :  { %v5793_v7 = vpop.xlane.xlu0 %123 }
  0x8d   :  { %v130_v6 = vpop.xlane.xlu1 %129  ;;  %v146_v9 = vsub.f32 %v5780_v0, %v5793_v7 }
  0x8e   :  { %v148_v8 = vsub.f32 0.0, %v130_v6 }
  0x8f   :  { %v154_v11 = vmul.f32 1.442695, %v146_v9 }
  0x90   :  { %v158_v10 = vmul.f32 1.442695, %v148_v8  ;;  %v127_v13 = vpop.xlane.xlu0 %126 }
  0x91   :  { %v133_v12 = vpop.xlane.xlu1 %132  ;;  %v147_v15 = vsub.f32 0.0, %v127_v13 }
  0x92   :  { %5715 = vpow2.f32 %v158_v10  ;;  %v149_v14 = vsub.f32 0.0, %v133_v12 }
  0x93   :  { %5717 = vpow2.f32 %v154_v11  ;;  %v156_v17 = vmul.f32 1.442695, %v147_v15 }
  0x94   :  { %v160_v16 = vmul.f32 1.442695, %v149_v14  ;;  %v136_v19 = vpop.xlane.xlu0 %135 }
  0x95   :  { %v139_v18 = vpop.xlane.xlu1 %138  ;;  %v150_v21 = vsub.f32 0.0, %v136_v19 }
  0x96   :  { %5719 = vpow2.f32 %v160_v16  ;;  %v151_v20 = vsub.f32 0.0, %v139_v18 }
  0x97   :  { %5721 = vpow2.f32 %v156_v17  ;;  %v162_v23 = vmul.f32 1.442695, %v150_v21  ;;  %v5871_v17 = vshrl.u32 %v6455_v2, 7 }
  0x98   :  { %v164_v22 = vmul.f32 1.442695, %v151_v20  ;;  %v142_v25 = vpop.xlane.xlu0 %141 }
  0x99   :  { %v145_v24 = vpop.xlane.xlu1 %144  ;;  %v152_v27 = vsub.f32 0.0, %v142_v25  ;;  %6459 = vst [vmem:[#allocation6_spill] sm:$0xff] %v5871_v17  ;;  %v5887_v25 = vld [vmem:[%s6451_s1] sm:$0xff] }
  0x9a   :  { %5723 = vpow2.f32 %v164_v22  ;;  %v153_v26 = vsub.f32 0.0, %v145_v24  ;;  %v998_v24 = vsub.s32 1, %v5871_v17 }
  0x9b   :  { %5725 = vpow2.f32 %v162_v23  ;;  %v166_v29 = vmul.f32 1.442695, %v152_v27 }
  0x9c   :  { %v168_v28 = vmul.f32 1.442695, %v153_v26 }
  0x9e   :  { %5727 = vpow2.f32 %v168_v28 }
  0x9f   :  { %v5716_v30 = vpop.eup %5715  ;;  %5729 = vpow2.f32 %v166_v29  ;;  %v999_v29 = vrot.slane %v5887_v25, %v998_v24 }
  0xa0   :  { %v5718_v31 = vpop.eup %5717  ;;  %v177_v32 = vsel %vm121_vm0, %v5716_v30, 0 }
  0xa1   :  { %v171_v33 = vsel %vm121_vm0, %v5718_v31, 0  ;;  %v5799_v34 = vand.u32 4294901760, %v177_v32  ;;  %v5897_v31 = vadd.s32 8, %v5871_v17  ;;  %vm1000_vm1 = vcmp.eq.s32.totalorder %v5871_v17, %v999_v29 }
  0xa2   :  { %v5801_v35 = vand.u32 4294901760, %v171_v33 }
  0xa3   :  { %v5720_v36 = vpop.eup %5719  ;;  %v5804_v37 = vsub.f32 %v177_v32, %v5799_v34  ;;  %6460 = vst [vmem:[#allocation7_spill] sm:$0xff] %v5897_v31  ;;  %vm1001_vm2 = vcmp.eq.s32.totalorder %v5897_v31, %v999_v29  ;;  %v5906_v32 = vsel %vm1000_vm1, 1.0, %v6454_v4 }
  0xa4   :  { %v5722_v38 = vpop.eup %5721  ;;  %5393 = vmatprep.mubr.f32.mxu1 %v5801_v35  ;;  %v5808_v39 = vsub.f32 %v171_v33, %v5801_v35  ;;  %v180_v40 = vsel %vm121_vm0, %v5720_v36, 0  ;;  %v5916_v33 = vsel %vm1001_vm2, 1.0, %v6454_v4  ;;  %v1008_v36 = vsel %vm1006_vm3, %v5906_v32, 0 }
  0xa5   :  { %v174_v41 = vsel %vm121_vm0, %v5722_v38, 0  ;;  %v5812_v42 = vand.u32 4294901760, %v180_v40  ;;  %v281_v46 = vand.u32 4294901760, %v5804_v37  ;;  %v6453_v38 = vsub.s32 0, %v5871_v17 }
  0xa6   :  { %v5814_v43 = vand.u32 4294901760, %v174_v41  ;;  %v261_v44 = vand.u32 4294901760, %v5808_v39 }
  0xa7   :  { %v5724_v45 = vpop.eup %5723  ;;  %v5819_v47 = vsub.f32 %v180_v40, %v5812_v42  ;;  %v282_v59 = vsub.f32 %v5804_v37, %v281_v46  ;;  %v989_v40 = vrot.slane %v5887_v25, %v6453_v38 }
  0xa8   :  { %v5726_v48 = vpop.eup %5725  ;;  %5394 = vmatmul.mubr.f32.vlgmr.msra.gmra.mxu1 %v5814_v43  ;;  %v262_v49 = vsub.f32 %v5808_v39, %v261_v44  ;;  %v5826_v50 = vsub.f32 %v174_v41, %v5814_v43  ;;  %v186_v51 = vsel %vm121_vm0, %v5724_v45, 0 }
  0xa9   :  { %5396 = vmatprep.mubr.f32.mxu1 %v5799_v34  ;;  %5406 = vmatpush3.msra.mxu1 %v6454_v4  ;;  %v183_v52 = vsel %vm121_vm0, %v5726_v48, 0  ;;  %v5832_v53 = vand.u32 4294901760, %v186_v51  ;;  %v291_v54 = vand.u32 4294901760, %v5819_v47  ;;  %v283_v13 = vand.u32 4294901760, %v282_v59 }
  0xaa   :  { %v263_v55 = vand.u32 4294901760, %v262_v49  ;;  %v5835_v56 = vand.u32 4294901760, %v183_v52  ;;  %v271_v57 = vand.u32 4294901760, %v5826_v50  ;;  %5435 = vmatprep.subr.mxu1 %v6454_v4  ;;  %vm990_vm4 = vcmp.eq.s32.totalorder %v5871_v17, %v989_v40 }
  0xab   :  { %v5728_v58 = vpop.eup %5727  ;;  %v5843_v60 = vsub.f32 %v186_v51, %v5832_v53  ;;  %v292_v6 = vsub.f32 %v5819_v47, %v291_v54  ;;  %vm991_vm5 = vcmp.eq.s32.totalorder %v5897_v31, %v989_v40  ;;  %v1999_v48 = vsub.s32 2, %v5871_v17 }
  0xac   :  { %v5730_v61 = vpop.eup %5729  ;;  %5379 = vmatprep.mubr.f32.mxu0 %v263_v55  ;;  %5397 = vmatmul.mubr.f32.gmra.mxu1 %v5812_v42  ;;  %v272_v62 = vsub.f32 %v5826_v50, %v271_v57  ;;  %v192_v63 = vsel %vm121_vm0, %v5728_v58, 0  ;;  %v5851_v1 = vsub.f32 %v183_v52, %v5835_v56  ;;  %v5971_v52 = vand.u32 4294901760, %v5780_v0 }
  0xad   :  { %5399 = vmatprep.mubr.f32.mxu1 %v5835_v56  ;;  %v189_v3 = vsel %vm121_vm0, %v5730_v61, 0  ;;  %v5858_v8 = vand.u32 4294901760, %v192_v63  ;;  %v311_v12 = vand.u32 4294901760, %v5843_v60  ;;  %v293_v18 = vand.u32 4294901760, %v292_v6 }
  0xae   :  { %v273_v9 = vand.u32 4294901760, %v272_v62  ;;  %v5860_v10 = vand.u32 4294901760, %v189_v3  ;;  %v301_v11 = vand.u32 4294901760, %v5851_v1  ;;  %v1626_v58 = vsub.f32 %v5780_v0, %v5971_v52 }
  0xaf   :  { %v5865_v14 = vsub.f32 %v192_v63, %v5858_v8  ;;  %v312_v20 = vsub.f32 %v5843_v60, %v311_v12 }
  0xb0   :  { %5380 = vmatmul.mubr.f32.vlgmr.msra.gmra.mxu0 %v273_v9  ;;  %5400 = vmatmul.mubr.f32.gmra.mxu1 %v5832_v53  ;;  %v302_v15 = vsub.f32 %v5851_v1, %v301_v11  ;;  %v320_v16 = vsub.f32 %v189_v3, %v5860_v10  ;;  %v1627_v0 = vand.u32 4294901760, %v1626_v58 }
  0xb1   :  { %5420 = vmatpush3.msra.mxu0 %v5759_v5  ;;  %5382 = vmatprep.mubr.f32.mxu0 %v283_v13  ;;  %v331_v22 = vand.u32 4294901760, %v5865_v14  ;;  %v313_v26 = vand.u32 4294901760, %v312_v20 }
  0xb2   :  { %5402 = vmatprep.mubr.f32.mxu1 %v5860_v10  ;;  %v303_v19 = vand.u32 4294901760, %v302_v15  ;;  %5421 = vmatprep.subr.mxu0 %v5759_v5  ;;  %v321_v21 = vand.u32 4294901760, %v320_v16 }
  0xb3   :  { %5422 = vmatpush3.msra.mxu0 %v5759_v5  ;;  %v332_v28 = vsub.f32 %v5865_v14, %v331_v22 }
  0xb4   :  { %5383 = vmatmul.mubr.f32.gmra.mxu0 %v293_v18  ;;  %5403 = vmatmul.mubr.f32.gmra.mxu1 %v5858_v8  ;;  %v322_v23 = vsub.f32 %v320_v16, %v321_v21 }
  0xb5   :  { %5385 = vmatprep.mubr.f32.mxu0 %v303_v19  ;;  %5407 = vmatprep.mubr.f32.mxu1 %v5808_v39  ;;  %v333_v30 = vand.u32 4294901760, %v332_v28  ;;  %v1011_v39 = vsel %vm1006_vm3, %v5916_v33, 0 }
  0xb6   :  { %v323_v27 = vand.u32 4294901760, %v322_v23  ;;  %5449 = vmatprep.subr.mxu0 %v5759_v5 }
  0xb8   :  { %5386 = vmatmul.mubr.f32.gmra.mxu0 %v313_v26  ;;  %5408 = vmatmul.mubr.f32.vlgmr.msra.gmra.mxu1 %v5826_v50 }
  0xb9   :  { %5388 = vmatprep.mubr.f32.mxu0 %v323_v27  ;;  %5410 = vmatprep.mubr.f32.mxu1 %v5804_v37  ;;  %v5926_v37 = vsub.f32 %v1008_v36, %v1008_v36 }
  0xba   :  { %5436 = vmatpush3.msra.mxu1 %v6454_v4 }
  0xbb   :  { %5465 = vmatprep.subr.mxu1 %v6454_v4  ;;  %v1081_v41 = vand.u32 4294901760, %v5926_v37 }
  0xbc   :  { %5389 = vmatmul.mubr.f32.gmra.mxu0 %v333_v30  ;;  %5411 = vmatmul.mubr.f32.gmra.mxu1 %v5819_v47  ;;  %v5956_v47 = vsel %vm991_vm5, 1.0, %v6454_v4 }
  0xbd   :  { %5413 = vmatprep.mubr.f32.mxu1 %v5851_v1  ;;  %5423 = vmatprep.mubr.f32.mxu0 %v261_v44  ;;  %v1082_v45 = vsub.f32 %v5926_v37, %v1081_v41  ;;  %v1506_v51 = vsel %vm1006_vm3, %v5956_v47, 0  ;;  %v1628_v1 = vsub.f32 %v1626_v58, %v1627_v0 }
  0xbf   :  { %v1083_v50 = vand.u32 4294901760, %v1082_v45 }
  0xc0   :  { %5414 = vmatmul.mubr.f32.gmra.mxu1 %v5843_v60  ;;  %5424 = vmatmul.mubr.f32.vlgmr.msra.gmra.mxu0 %v271_v57  ;;  %v5980_v57 = vsub.f32 %v1506_v51, %v1506_v51 }
  0xc1   :  { %5450 = vmatpush3.msra.mxu0 %v5759_v5  ;;  %5416 = vmatprep.mubr.f32.mxu1 %v320_v16  ;;  %v3013_v16 = vsub.s32 4, %v5871_v17 }
  0xc2   :  { %5426 = vmatprep.mubr.f32.mxu0 %v281_v46  ;;  %5451 = vmatprep.subr.mxu0 %v5759_v5  ;;  %v5953_v46 = vsel %vm990_vm4, 1.0, %v6454_v4 }
  0xc3   :  { %5452 = vmatpush3.msra.mxu0 %v5759_v5  ;;  %v5937_v5 = vsub.f32 %v1011_v39, %v1011_v39  ;;  %v1503_v49 = vsel %vm1006_vm3, %v5953_v46, 0 }
  0xc4   :  { %5417 = vmatmul.mubr.f32.gmra.mxu1 %v5865_v14  ;;  %5427 = vmatmul.mubr.f32.gmra.mxu0 %v291_v54  ;;  %v5976_v54 = vsub.f32 %v1503_v49, %v1503_v49 }
  0xc5   :  { %5429 = vmatprep.mubr.f32.mxu0 %v301_v11  ;;  %5437 = vmatprep.mubr.f32.mxu1 %v5801_v35  ;;  %v1091_v44 = vand.u32 4294901760, %v5937_v5  ;;  %v1629_v11 = vand.u32 4294901760, %v1628_v1 }
  0xc6   :  { %5470 = vmatprep.subr.mxu0 %v6454_v4 }
  0xc8   :  { %5430 = vmatmul.mubr.f32.gmra.mxu0 %v311_v12  ;;  %5438 = vmatmul.mubr.f32.vlgmr.msra.gmra.mxu1 %v5814_v43 }
  0xc9   :  { %5432 = vmatprep.mubr.f32.mxu0 %v321_v21  ;;  %5440 = vmatprep.mubr.f32.mxu1 %v5799_v34 }
  0xca   :  { %5466 = vmatpush3.msra.mxu1 %v6454_v4 }
  0xcb   :  { %5475 = vmatprep.subr.mxu1 %v6454_v4 }
  0xcc   :  { %5433 = vmatmul.mubr.f32.gmra.mxu0 %v331_v22  ;;  %5441 = vmatmul.mubr.f32.gmra.mxu1 %v5812_v42  ;;  %v3014_v22 = vrot.slane %v5887_v25, %v3013_v16 }
  0xcd   :  { %5443 = vmatprep.mubr.f32.mxu1 %v5835_v56  ;;  %5453 = vmatprep.mubr.f32.mxu0 %v5801_v35  ;;  %v1092_v35 = vsub.f32 %v5937_v5, %v1091_v44 }
  0xce   :  { %vm3015_vm10 = vcmp.eq.s32.totalorder %v5871_v17, %v3014_v22  ;;  %vm3016_vm11 = vcmp.eq.s32.totalorder %v5897_v31, %v3014_v22 }
  0xcf   :  { %v1093_v55 = vand.u32 4294901760, %v1092_v35  ;;  %v6094_v30 = vsel %vm3015_vm10, 1.0, %v6454_v4 }
  0xd0   :  { %5444 = vmatmul.mubr.f32.gmra.mxu1 %v5832_v53  ;;  %5454 = vmatmul.mubr.f32.vlgmr.msra.gmra.mxu0 %v5814_v43  ;;  %v2000_v43 = vrot.slane %v5887_v25, %v1999_v48  ;;  %v3022_v39 = vsel %vm1006_vm3, %v6094_v30, 0 }
  0xd1   :  { %5471 = vmatpush3.msra.mxu0 %v6454_v4  ;;  %5446 = vmatprep.mubr.f32.mxu1 %v5860_v10 }
  0xd2   :  { %5456 = vmatprep.mubr.f32.mxu0 %v5799_v34  ;;  %5480 = vmatprep.subr.mxu0 %v6454_v4  ;;  %vm2001_vm6 = vcmp.eq.s32.totalorder %v5871_v17, %v2000_v43  ;;  %v1576_v34 = vand.u32 4294901760, %v5976_v54  ;;  %vm2002_vm7 = vcmp.eq.s32.totalorder %v5897_v31, %v2000_v43 }
  0xd3   :  { %v5998_v59 = vsel %vm2002_vm7, 1.0, %v6454_v4 }
  0xd4   :  { %5447 = vmatmul.mubr.f32.gmra.mxu1 %v5858_v8  ;;  %5457 = vmatmul.mubr.f32.gmra.mxu0 %v5812_v42  ;;  %v1586_v42 = vand.u32 4294901760, %v5980_v57  ;;  %v1577_v60 = vsub.f32 %v5976_v54, %v1576_v34  ;;  %v2011_v63 = vsel %vm1006_vm3, %v5998_v59, 0 }
  0xd5   :  { %5459 = vmatprep.mubr.f32.mxu0 %v5835_v56  ;;  %5467 = vmatprep.mubr.f32.mxu1 %v1083_v50  ;;  %v5993_v56 = vsel %vm2001_vm6, 1.0, %v6454_v4  ;;  %v4027_v50 = vsub.s32 6, %v5871_v17  ;;  %vm76_vm6 = vcmask 0  }
  0xd6   :  { %v1587_v61 = vsub.f32 %v5980_v57, %v1586_v42  ;;  %v2008_v62 = vsel %vm1006_vm3, %v5993_v56, 0  ;;  %v1578_v6 = vand.u32 4294901760, %v1577_v60  ;;  %v4534_v60 = vsub.s32 7, %v5871_v17 }
  0xd8   :  { %5460 = vmatmul.mubr.f32.gmra.mxu0 %v5832_v53  ;;  %5468 = vmatmul.mubr.f32.vlgmr.msra.gmra.mxu1 %v1093_v55  ;;  %v2506_v53 = vsub.s32 3, %v5871_v17  ;;  %v1588_v9 = vand.u32 4294901760, %v1587_v61  ;;  %v4028_v55 = vrot.slane %v5887_v25, %v4027_v50 }
  0xd9   :  { %5462 = vmatprep.mubr.f32.mxu0 %v5860_v10  ;;  %5476 = vmatpush3.msra.mxu1 %v6454_v4  ;;  %v6026_v10 = vsub.f32 %v2011_v63, %v2011_v63 }
  0xda   :  { %5477 = vmatprep.mubr.f32.mxu1 %v5926_v37  ;;  %5485 = vmatprep.subr.mxu1 %v6454_v4  ;;  %v2507_v3 = vrot.slane %v5887_v25, %v2506_v53  ;;  %vm4029_vm14 = vcmp.eq.s32.totalorder %v5871_v17, %v4028_v55  ;;  %vm4030_vm15 = vcmp.eq.s32.totalorder %v5897_v31, %v4028_v55 }
  0xdb   :  { %v2091_v13 = vand.u32 4294901760, %v6026_v10  ;;  %v6211_v53 = vsel %vm4030_vm15, 1.0, %v6454_v4 }
  0xdc   :  { %5463 = vmatmul.mubr.f32.gmra.mxu0 %v5858_v8  ;;  %5478 = vmatmul.mubr.f32.vlgmr.msra.gmra.mxu1 %v5937_v5  ;;  %v6020_v8 = vsub.f32 %v2008_v62, %v2008_v62  ;;  %vm2508_vm8 = vcmp.eq.s32.totalorder %v5871_v17, %v2507_v3  ;;  %vm2509_vm9 = vcmp.eq.s32.totalorder %v5897_v31, %v2507_v3  ;;  %v4039_v1 = vsel %vm1006_vm3, %v6211_v53, 0 }
  0xdd   :  { %5472 = vmatprep.mubr.msk.f32.mxu0 %vm1006_vm3, %v5906_v32  ;;  %5486 = vmatpush3.msra.mxu1 %v6454_v4  ;;  %v6043_v14 = vsel %vm2508_vm8, 1.0, %v6454_v4  ;;  %v6046_v15 = vsel %vm2509_vm9, 1.0, %v6454_v4  ;;  %v2092_v19 = vsub.f32 %v6026_v10, %v2091_v13  ;;  %v4535_v3 = vrot.slane %v5887_v25, %v4534_v60 }
  0xde   :  { %5487 = vmatprep.mubr.msk.f32.mxu1 %vm1006_vm3, %v5906_v32  ;;  %5495 = vmatprep.subr.mxu1 %v5971_v52  ;;  %v2081_v12 = vand.u32 4294901760, %v6020_v8  ;;  %v2515_v20 = vsel %vm1006_vm3, %v6043_v14, 0  ;;  %v2518_v21 = vsel %vm1006_vm3, %v6046_v15, 0 }
  0xdf   :  { %v6070_v24 = vsub.f32 %v2515_v20, %v2515_v20  ;;  %v2093_v26 = vand.u32 4294901760, %v2092_v19  ;;  %v6076_v27 = vsub.f32 %v2518_v21, %v2518_v21  ;;  %vm4536_vm1 = vcmp.eq.s32.totalorder %v5871_v17, %v4535_v3 }
  0xe0   :  { %5473 = vmatmul.mubr.msk.f32.vlgmr.msra.gmra.mxu0 %vm1006_vm3, %v5916_v33  ;;  %5488 = vmatmul.mubr.msk.f32.vlgmr.msra.gmra.mxu1 %vm1006_vm3, %v5916_v33  ;;  %v2082_v18 = vsub.f32 %v6020_v8, %v2081_v12  ;;  %vm4537_vm2 = vcmp.eq.s32.totalorder %v5897_v31, %v4535_v3 }
  0xe1   :  { %5481 = vmatpush3.msra.mxu0 %v6454_v4  ;;  %5482 = vmatprep.mubr.f32.mxu0 %v1081_v41  ;;  %v2588_v28 = vand.u32 4294901760, %v6070_v24  ;;  %v2598_v29 = vand.u32 4294901760, %v6076_v27 }
  0xe2   :  { %5490 = vmatprep.subr.mxu0 %v6454_v4  ;;  %5496 = vmatpush3.msra.mxu1 %v5971_v52  ;;  %v2083_v23 = vand.u32 4294901760, %v2082_v18 }
  0xe3   :  { %5497 = vmatprep.mubr.f32.mxu1 %v1578_v6  ;;  %5505 = vmatprep.subr.mxu1 %v1626_v58  ;;  %v2589_v36 = vsub.f32 %v6070_v24, %v2588_v28  ;;  %v2599_v37 = vsub.f32 %v6076_v27, %v2598_v29 }
  0xe4   :  { %5483 = vmatmul.mubr.f32.vlgmr.msra.gmra.mxu0 %v1091_v44  ;;  %5498 = vmatmul.mubr.f32.vlgmr.msra.gmra.mxu1 %v1588_v9  ;;  %v6126_v44 = vsub.f32 %v3022_v39, %v3022_v39 }
  0xe5   :  { %5491 = vmatpush3.msra.mxu0 %v6454_v4  ;;  %5492 = vmatprep.mubr.msk.f32.mxu0 %vm1006_vm3, %v5906_v32  ;;  %v6099_v32 = vsel %vm3016_vm11, 1.0, %v6454_v4  ;;  %v2590_v41 = vand.u32 4294901760, %v2589_v36  ;;  %v2600_v45 = vand.u32 4294901760, %v2599_v37 }
  0xe6   :  { %5500 = vmatprep.subr.mxu0 %v1629_v11  ;;  %5506 = vmatpush3.msra.mxu1 %v1626_v58  ;;  %v3025_v40 = vsel %vm1006_vm3, %v6099_v32, 0 }
  0xe7   :  { %5507 = vmatprep.mubr.f32.mxu1 %v5976_v54  ;;  %5515 = vmatprep.subr.mxu1 %v1627_v0 }
  0xe8   :  { %5493 = vmatmul.mubr.msk.f32.vlgmr.msra.gmra.mxu0 %vm1006_vm3, %v5916_v33  ;;  %5508 = vmatmul.mubr.f32.vlgmr.msra.gmra.mxu1 %v5980_v57  ;;  %v3520_v33 = vsub.s32 5, %v5871_v17 }
  0xe9   :  { %5501 = vmatpush3.msra.mxu0 %v1629_v11  ;;  %5502 = vmatprep.mubr.msk.f32.mxu0 %vm1006_vm3, %v5953_v46 }
  0xea   :  { %5510 = vmatprep.subr.mxu0 %v5971_v52  ;;  %5516 = vmatpush3.msra.mxu1 %v1627_v0  ;;  %v3521_v5 = vrot.slane %v5887_v25, %v3520_v33 }
  0xeb   :  { %5517 = vmatprep.mubr.msk.f32.mxu1 %vm1006_vm3, %v5953_v46  ;;  %5525 = vmatprep.subr.mxu1 %v6454_v4 }
  0xec   :  { %5503 = vmatmul.mubr.msk.f32.vlgmr.msra.gmra.mxu0 %vm1006_vm3, %v5956_v47  ;;  %5518 = vmatmul.mubr.msk.f32.vlgmr.msra.gmra.mxu1 %vm1006_vm3, %v5956_v47  ;;  %vm3522_vm12 = vcmp.eq.s32.totalorder %v5871_v17, %v3521_v5  ;;  %vm3523_vm13 = vcmp.eq.s32.totalorder %v5897_v31, %v3521_v5 }
  0xed   :  { %5511 = vmatpush3.msra.mxu0 %v5971_v52  ;;  %5512 = vmatprep.mubr.f32.mxu0 %v1576_v34  ;;  %v6150_v35 = vsel %vm3522_vm12, 1.0, %v6454_v4  ;;  %v6155_v49 = vsel %vm3523_vm13, 1.0, %v6454_v4 }
  0xee   :  { %5520 = vmatprep.subr.mxu0 %v5971_v52  ;;  %5526 = vmatpush3.msra.mxu1 %v6454_v4  ;;  %v3529_v43 = vsel %vm1006_vm3, %v6150_v35, 0  ;;  %v3532_v54 = vsel %vm1006_vm3, %v6155_v49, 0 }
  0xef   :  { %5527 = vmatprep.mubr.f32.mxu1 %v2083_v23  ;;  %5535 = vmatprep.subr.mxu1 %v6454_v4  ;;  %v6182_v58 = vsub.f32 %v3529_v43, %v3529_v43 }
  0xf0   :  { %5513 = vmatmul.mubr.f32.vlgmr.msra.gmra.mxu0 %v1586_v42  ;;  %5528 = vmatmul.mubr.f32.vlgmr.msra.gmra.mxu1 %v2093_v26  ;;  %v6188_v42 = vsub.f32 %v3532_v54, %v3532_v54 }
  0xf1   :  { %5521 = vmatpush3.msra.mxu0 %v5971_v52  ;;  %5522 = vmatprep.mubr.msk.f32.mxu0 %vm1006_vm3, %v5953_v46  ;;  %v6132_v46 = vsub.f32 %v3025_v40, %v3025_v40 }
  0xf2   :  { %5530 = vmatprep.subr.mxu0 %v6454_v4  ;;  %5536 = vmatpush3.msra.mxu1 %v6454_v4  ;;  %v3612_v0 = vand.u32 4294901760, %v6188_v42 }
  0xf3   :  { %5537 = vmatprep.mubr.f32.mxu1 %v6020_v8  ;;  %5545 = vmatprep.subr.mxu1 %v6454_v4  ;;  %v3105_v48 = vand.u32 4294901760, %v6132_v46 }
  0xf4   :  { %5523 = vmatmul.mubr.msk.f32.vlgmr.msra.gmra.mxu0 %vm1006_vm3, %v5956_v47  ;;  %5538 = vmatmul.mubr.f32.vlgmr.msra.gmra.mxu1 %v6026_v10  ;;  %v3095_v47 = vand.u32 4294901760, %v6126_v44  ;;  %v3613_v62 = vsub.f32 %v6188_v42, %v3612_v0  ;;  %v6244_v10 = vsub.f32 %v4039_v1, %v4039_v1 }
  0xf5   :  { %5531 = vmatpush3.msra.mxu0 %v6454_v4  ;;  %5532 = vmatprep.mubr.msk.f32.mxu0 %vm1006_vm3, %v5993_v56  ;;  %v3106_v52 = vsub.f32 %v6132_v46, %v3105_v48 }
  0xf6   :  { %5540 = vmatprep.subr.mxu0 %v6454_v4  ;;  %5546 = vmatpush3.msra.mxu1 %v6454_v4  ;;  %v3096_v51 = vsub.f32 %v6126_v44, %v3095_v47  ;;  %v3614_v9 = vand.u32 4294901760, %v3613_v62  ;;  %v4119_v11 = vand.u32 4294901760, %v6244_v10 }
  0xf7   :  { %5547 = vmatprep.mubr.msk.f32.mxu1 %vm1006_vm3, %v5993_v56  ;;  %5555 = vmatprep.subr.mxu1 %v6454_v4  ;;  %v3107_v34 = vand.u32 4294901760, %v3106_v52 }
  0xf8   :  { %5533 = vmatmul.mubr.msk.f32.vlgmr.msra.gmra.mxu0 %vm1006_vm3, %v5998_v59  ;;  %5548 = vmatmul.mubr.msk.f32.vlgmr.msra.gmra.mxu1 %vm1006_vm3, %v5998_v59  ;;  %v3097_v57 = vand.u32 4294901760, %v3096_v51 }
  0xf9   :  { %5541 = vmatpush3.msra.mxu0 %v6454_v4  ;;  %5542 = vmatprep.mubr.f32.mxu0 %v2081_v12  ;;  %v6262_v12 = vsel %vm4536_vm1, 1.0, %v6454_v4 }
  0xfa   :  { %5550 = vmatprep.subr.mxu0 %v6454_v4  ;;  %5556 = vmatpush3.msra.mxu1 %v6454_v4  ;;  %v4543_v16 = vsel %vm1006_vm3, %v6262_v12, 0 }
  0xfb   :  { %5557 = vmatprep.mubr.f32.mxu1 %v2590_v41  ;;  %5565 = vmatprep.subr.mxu1 %v6454_v4  ;;  %v4615_v20 = vsub.f32 %v4543_v16, %v4543_v16 }
  0xfc   :  { %5543 = vmatmul.mubr.f32.vlgmr.msra.gmra.mxu0 %v2091_v13  ;;  %5558 = vmatmul.mubr.f32.vlgmr.msra.gmra.mxu1 %v2600_v45  ;;  %v6267_v13 = vsel %vm4537_vm2, 1.0, %v6454_v4 }
  0xfd   :  { %5551 = vmatpush3.msra.mxu0 %v6454_v4  ;;  %5552 = vmatprep.mubr.msk.f32.mxu0 %vm1006_vm3, %v5993_v56  ;;  %v3602_v56 = vand.u32 4294901760, %v6182_v58  ;;  %v4546_v18 = vsel %vm1006_vm3, %v6267_v13, 0  ;;  %v4616_v23 = vand.u32 4294901760, %v4615_v20 }
  0xfe   :  { %5560 = vmatprep.subr.mxu0 %v6454_v4  ;;  %5566 = vmatpush3.msra.mxu1 %v6454_v4  ;;  %v4625_v22 = vsub.f32 %v4546_v18, %v4546_v18 }
  0xff   :  { %5567 = vmatprep.mubr.f32.mxu1 %v6070_v24  ;;  %5575 = vmatprep.subr.mxu1 %v6454_v4  ;;  %v3603_v61 = vsub.f32 %v6182_v58, %v3602_v56  ;;  %v4617_v26 = vsub.f32 %v4615_v20, %v4616_v23 }
 0x100   :  { %5553 = vmatmul.mubr.msk.f32.vlgmr.msra.gmra.mxu0 %vm1006_vm3, %v5998_v59  ;;  %5568 = vmatmul.mubr.f32.vlgmr.msra.gmra.mxu1 %v6076_v27  ;;  %v6206_v59 = vsel %vm4029_vm14, 1.0, %v6454_v4  ;;  %v4626_v24 = vand.u32 4294901760, %v4625_v22 }
 0x101   :  { %5561 = vmatpush3.msra.mxu0 %v6454_v4  ;;  %5562 = vmatprep.mubr.msk.f32.mxu0 %vm1006_vm3, %v6043_v14  ;;  %v4036_v63 = vsel %vm1006_vm3, %v6206_v59, 0  ;;  %v3604_v6 = vand.u32 4294901760, %v3603_v61 }
 0x102   :  { %5570 = vmatprep.subr.mxu0 %v6454_v4  ;;  %5576 = vmatpush3.msra.mxu1 %v6454_v4  ;;  %v6238_v8 = vsub.f32 %v4036_v63, %v4036_v63  ;;  %v4627_v27 = vsub.f32 %v4625_v22, %v4626_v24 }
 0x103   :  { %5577 = vmatprep.mubr.msk.f32.mxu1 %vm1006_vm3, %v6043_v14  ;;  %5585 = vmatprep.subr.mxu1 %v6454_v4 }
 0x104   :  { %5563 = vmatmul.mubr.msk.f32.vlgmr.msra.gmra.mxu0 %vm1006_vm3, %v6046_v15  ;;  %5578 = vmatmul.mubr.msk.f32.vlgmr.msra.gmra.mxu1 %vm1006_vm3, %v6046_v15  ;;  %v4109_v25 = vand.u32 4294901760, %v6238_v8 }
 0x105   :  { %5571 = vmatpush3.msra.mxu0 %v6454_v4  ;;  %5572 = vmatprep.mubr.f32.mxu0 %v2588_v28  ;;  %v4618_v28 = vand.u32 4294901760, %v4617_v26 }
 0x106   :  { %5580 = vmatprep.subr.mxu0 %v6454_v4  ;;  %5586 = vmatpush3.msra.mxu1 %v6454_v4 }
 0x107   :  { %5587 = vmatprep.mubr.f32.mxu1 %v3097_v57  ;;  %5595 = vmatprep.subr.mxu1 %v6454_v4 }
 0x108   :  { %5573 = vmatmul.mubr.f32.vlgmr.msra.gmra.mxu0 %v2598_v29  ;;  %5588 = vmatmul.mubr.f32.vlgmr.msra.gmra.mxu1 %v3107_v34  ;;  %v4628_v29 = vand.u32 4294901760, %v4627_v27 }
 0x109   :  { %5581 = vmatpush3.msra.mxu0 %v6454_v4  ;;  %5582 = vmatprep.mubr.msk.f32.mxu0 %vm1006_vm3, %v6043_v14  ;;  %v4110_v14 = vsub.f32 %v6238_v8, %v4109_v25 }
 0x10a   :  { %5590 = vmatprep.subr.mxu0 %v6454_v4  ;;  %5596 = vmatpush3.msra.mxu1 %v6454_v4 }
 0x10b   :  { %5597 = vmatprep.mubr.f32.mxu1 %v6126_v44  ;;  %5605 = vmatprep.subr.mxu1 %v6454_v4  ;;  %v4111_v19 = vand.u32 4294901760, %v4110_v14 }
 0x10c   :  { %5583 = vmatmul.mubr.msk.f32.vlgmr.msra.gmra.mxu0 %vm1006_vm3, %v6046_v15  ;;  %5598 = vmatmul.mubr.f32.vlgmr.msra.gmra.mxu1 %v6132_v46  ;;  %v4120_v15 = vsub.f32 %v6244_v10, %v4119_v11 }
 0x10d   :  { %5591 = vmatpush3.msra.mxu0 %v6454_v4  ;;  %5592 = vmatprep.mubr.msk.f32.mxu0 %vm1006_vm3, %v6094_v30 }
 0x10e   :  { %5600 = vmatprep.subr.mxu0 %v6454_v4  ;;  %5606 = vmatpush3.msra.mxu1 %v6454_v4  ;;  %v4121_v21 = vand.u32 4294901760, %v4120_v15 }
 0x10f   :  { %5607 = vmatprep.mubr.msk.f32.mxu1 %vm1006_vm3, %v6094_v30  ;;  %5615 = vmatprep.subr.mxu1 %v6454_v4 }
 0x110   :  { %5593 = vmatmul.mubr.msk.f32.vlgmr.msra.gmra.mxu0 %vm1006_vm3, %v6099_v32  ;;  %5608 = vmatmul.mubr.msk.f32.vlgmr.msra.gmra.mxu1 %vm1006_vm3, %v6099_v32 }
 0x111   :  { %5601 = vmatpush3.msra.mxu0 %v6454_v4  ;;  %5602 = vmatprep.mubr.f32.mxu0 %v3095_v47 }
 0x112   :  { %5610 = vmatprep.subr.mxu0 %v6454_v4  ;;  %5616 = vmatpush3.msra.mxu1 %v6454_v4 }
 0x113   :  { %5617 = vmatprep.mubr.f32.mxu1 %v3604_v6  ;;  %5625 = vmatprep.subr.mxu1 %v6454_v4 }
 0x114   :  { %5603 = vmatmul.mubr.f32.vlgmr.msra.gmra.mxu0 %v3105_v48  ;;  %5618 = vmatmul.mubr.f32.vlgmr.msra.gmra.mxu1 %v3614_v9 }
 0x115   :  { %5611 = vmatpush3.msra.mxu0 %v6454_v4  ;;  %5612 = vmatprep.mubr.msk.f32.mxu0 %vm1006_vm3, %v6094_v30 }
 0x116   :  { %5620 = vmatprep.subr.mxu0 %v6454_v4  ;;  %5626 = vmatpush3.msra.mxu1 %v6454_v4 }
 0x117   :  { %5627 = vmatprep.mubr.f32.mxu1 %v6182_v58  ;;  %5635 = vmatprep.subr.mxu1 %v6454_v4 }
 0x118   :  { %5613 = vmatmul.mubr.msk.f32.vlgmr.msra.gmra.mxu0 %vm1006_vm3, %v6099_v32  ;;  %5628 = vmatmul.mubr.f32.vlgmr.msra.gmra.mxu1 %v6188_v42 }
 0x119   :  { %5621 = vmatpush3.msra.mxu0 %v6454_v4  ;;  %5622 = vmatprep.mubr.msk.f32.mxu0 %vm1006_vm3, %v6150_v35 }
 0x11a   :  { %5630 = vmatprep.subr.mxu0 %v6454_v4  ;;  %5636 = vmatpush3.msra.mxu1 %v6454_v4 }
 0x11b   :  { %5637 = vmatprep.mubr.msk.f32.mxu1 %vm1006_vm3, %v6150_v35  ;;  %5645 = vmatprep.subr.mxu1 %v6454_v4 }
 0x11c   :  { %5623 = vmatmul.mubr.msk.f32.vlgmr.msra.gmra.mxu0 %vm1006_vm3, %v6155_v49  ;;  %5638 = vmatmul.mubr.msk.f32.vlgmr.msra.gmra.mxu1 %vm1006_vm3, %v6155_v49 }
 0x11d   :  { %5631 = vmatpush3.msra.mxu0 %v6454_v4  ;;  %5632 = vmatprep.mubr.f32.mxu0 %v3602_v56 }
 0x11e   :  { %5640 = vmatprep.subr.mxu0 %v6454_v4  ;;  %5646 = vmatpush3.msra.mxu1 %v6454_v4 }
 0x11f   :  { %5647 = vmatprep.mubr.f32.mxu1 %v4111_v19  ;;  %5655 = vmatprep.subr.mxu1 %v6454_v4 }
 0x120   :  { %5633 = vmatmul.mubr.f32.vlgmr.msra.gmra.mxu0 %v3612_v0  ;;  %5648 = vmatmul.mubr.f32.vlgmr.msra.gmra.mxu1 %v4121_v21 }
 0x121   :  { %5641 = vmatpush3.msra.mxu0 %v6454_v4  ;;  %5642 = vmatprep.mubr.msk.f32.mxu0 %vm1006_vm3, %v6150_v35 }
 0x122   :  { %5650 = vmatprep.subr.mxu0 %v6454_v4  ;;  %5656 = vmatpush3.msra.mxu1 %v6454_v4 }
 0x123   :  { %5657 = vmatprep.mubr.f32.mxu1 %v6238_v8  ;;  %5665 = vmatprep.subr.mxu1 %v6454_v4 }
 0x124   :  { %5643 = vmatmul.mubr.msk.f32.vlgmr.msra.gmra.mxu0 %vm1006_vm3, %v6155_v49  ;;  %5658 = vmatmul.mubr.f32.vlgmr.msra.gmra.mxu1 %v6244_v10 }
 0x125   :  { %5651 = vmatpush3.msra.mxu0 %v6454_v4  ;;  %5652 = vmatprep.mubr.msk.f32.mxu0 %vm1006_vm3, %v6206_v59 }
 0x126   :  { %5660 = vmatprep.subr.mxu0 %v6454_v4  ;;  %5666 = vmatpush3.msra.mxu1 %v6454_v4 }
 0x127   :  { %5667 = vmatprep.mubr.msk.f32.mxu1 %vm1006_vm3, %v6206_v59  ;;  %5675 = vmatprep.subr.mxu1 %v6454_v4 }
 0x128   :  { %5653 = vmatmul.mubr.msk.f32.vlgmr.msra.gmra.mxu0 %vm1006_vm3, %v6211_v53  ;;  %5668 = vmatmul.mubr.msk.f32.vlgmr.msra.gmra.mxu1 %vm1006_vm3, %v6211_v53 }
 0x129   :  { %5661 = vmatpush3.msra.mxu0 %v6454_v4  ;;  %5662 = vmatprep.mubr.f32.mxu0 %v4109_v25 }
 0x12a   :  { %5670 = vmatprep.subr.mxu0 %v6454_v4  ;;  %5676 = vmatpush3.msra.mxu1 %v6454_v4 }
 0x12b   :  { %5677 = vmatprep.mubr.f32.mxu1 %v4618_v28  ;;  %5685 = vmatprep.subr.mxu1 %v6454_v4 }
 0x12c   :  { %5663 = vmatmul.mubr.f32.vlgmr.msra.gmra.mxu0 %v4119_v11  ;;  %5678 = vmatmul.mubr.f32.vlgmr.msra.gmra.mxu1 %v4628_v29 }
 0x12d   :  { %5671 = vmatpush3.msra.mxu0 %v6454_v4  ;;  %5672 = vmatprep.mubr.msk.f32.mxu0 %vm1006_vm3, %v6206_v59 }
 0x12e   :  { %5680 = vmatprep.subr.mxu0 %v6454_v4  ;;  %5686 = vmatpush3.msra.mxu1 %v6454_v4 }
 0x12f   :  { %5687 = vmatprep.mubr.f32.mxu1 %v4615_v20  ;;  %5695 = vmatprep.subr.mxu1 %v6454_v4 }
 0x130   :  { %5673 = vmatmul.mubr.msk.f32.vlgmr.msra.gmra.mxu0 %vm1006_vm3, %v6211_v53  ;;  %5688 = vmatmul.mubr.f32.vlgmr.msra.gmra.mxu1 %v4625_v22 }
 0x131   :  { %5681 = vmatpush3.msra.mxu0 %v6454_v4  ;;  %5682 = vmatprep.mubr.msk.f32.mxu0 %vm1006_vm3, %v6262_v12 }
 0x132   :  { %5690 = vmatprep.subr.mxu0 %v6454_v4  ;;  %5696 = vmatpush3.msra.mxu1 %v6454_v4 }
 0x133   :  { %5697 = vmatprep.mubr.msk.f32.mxu1 %vm1006_vm3, %v6262_v12 }
 0x134   :  { %5683 = vmatmul.mubr.msk.f32.vlgmr.msra.gmra.mxu0 %vm1006_vm3, %v6267_v13  ;;  %5698 = vmatmul.mubr.msk.f32.vlgmr.msra.gmra.mxu1 %vm1006_vm3, %v6267_v13 }
 0x135   :  { %5691 = vmatpush3.msra.mxu0 %v6454_v4  ;;  %5692 = vmatprep.mubr.f32.mxu0 %v4616_v23 }
 0x136   :  { %5700 = vmatprep.subr.mxu0 %v6454_v4 }
 0x138   :  { %5693 = vmatmul.mubr.f32.vlgmr.msra.gmra.mxu0 %v4626_v24 }
 0x139   :  { %5701 = vmatpush3.msra.mxu0 %v6454_v4  ;;  %5702 = vmatprep.mubr.msk.f32.mxu0 %vm1006_vm3, %v6262_v12 }
 0x13c   :  { %5703 = vmatmul.mubr.msk.f32.vlgmr.msra.gmra.mxu0 %vm1006_vm3, %v6267_v13  ;;  %vm960_vm3 = vcmask 7168  }
 0x168   :  { %v5395_v30 = vpop.f32.mrf.mxu1 }
 0x16a   :  { %v406_v32 = vpop.f32.mrf.mxu1 }
 0x16c   :  { %v5398_v33 = vpop.f32.mrf.mxu1 }
 0x16e   :  { %v418_v36 = vpop.f32.mrf.mxu1 }
 0x170   :  { %v5381_v37 = vpop.f32.mrf.mxu0  ;;  %v5401_v39 = vpop.f32.mrf.mxu1 }
 0x172   :  { %v265_v40 = vpop.f32.mrf.mxu0  ;;  %v430_v5 = vpop.f32.mrf.mxu1 }
 0x173   :  { %v407_v62 = vadd.f32 %v406_v32, %v265_v40 }
 0x174   :  { %v5384_v41 = vpop.f32.mrf.mxu0  ;;  %v5404_v44 = vpop.f32.mrf.mxu1 }
 0x176   :  { %v285_v45 = vpop.f32.mrf.mxu0  ;;  %v442_v46 = vpop.f32.mrf.mxu1 }
 0x178   :  { %v5387_v47 = vpop.f32.mrf.mxu0  ;;  %v5409_v48 = vpop.f32.mrf.mxu1 }
 0x17a   :  { %v305_v35 = vpop.f32.mrf.mxu0  ;;  %v520_v49 = vpop.f32.mrf.mxu1 }
 0x17b   :  { %v521_v3 = vadd.f32 %v520_v49, %v407_v62 }
 0x17c   :  { %v5390_v50 = vpop.f32.mrf.mxu0  ;;  %v5412_v51 = vpop.f32.mrf.mxu1 }
 0x17e   :  { %v325_v52 = vpop.f32.mrf.mxu0  ;;  %v534_v43 = vpop.f32.mrf.mxu1 }
 0x180   :  { %v5415_v54 = vpop.f32.mrf.mxu1  ;;  %v5425_v55 = vpop.f32.mrf.mxu0 }
 0x182   :  { %v548_v57 = vpop.f32.mrf.mxu1  ;;  %v642_v58 = vpop.f32.mrf.mxu0 }
 0x183   :  { %v643_v9 = vadd.f32 %v642_v58, %v521_v3 }
 0x184   :  { %v5418_v34 = vpop.f32.mrf.mxu1  ;;  %v5428_v42 = vpop.f32.mrf.mxu0 }
 0x186   :  { %v562_v56 = vpop.f32.mrf.mxu1  ;;  %v658_v0 = vpop.f32.mrf.mxu0 }
 0x188   :  { %v5431_v59 = vpop.f32.mrf.mxu0  ;;  %v5439_v53 = vpop.f32.mrf.mxu1 }
 0x18a   :  { %v674_v60 = vpop.f32.mrf.mxu0  ;;  %v769_v61 = vpop.f32.mrf.mxu1 }
 0x18b   :  { %v770_v11 = vadd.f32 %v769_v61, %v643_v9 }
 0x18c   :  { %v5434_v63 = vpop.f32.mrf.mxu0  ;;  %v5442_v1 = vpop.f32.mrf.mxu1 }
 0x18e   :  { %v690_v6 = vpop.f32.mrf.mxu0  ;;  %v781_v8 = vpop.f32.mrf.mxu1 }
 0x190   :  { %v5445_v10 = vpop.f32.mrf.mxu1  ;;  %v5455_v25 = vpop.f32.mrf.mxu0 }
 0x192   :  { %v793_v12 = vpop.f32.mrf.mxu1  ;;  %v882_v13 = vpop.f32.mrf.mxu0 }
 0x193   :  { %v883_v14 = vadd.f32 %v882_v13, %v770_v11 }
 0x194   :  { %v5448_v15 = vpop.f32.mrf.mxu1  ;;  %v5458_v16 = vpop.f32.mrf.mxu0 }
 0x195   :  { %5731 = vlog2.f32 %v883_v14 }
 0x196   :  { %v805_v18 = vpop.f32.mrf.mxu1  ;;  %v894_v19 = vpop.f32.mrf.mxu0 }
 0x198   :  { %v5461_v20 = vpop.f32.mrf.mxu0  ;;  %v5469_v21 = vpop.f32.mrf.mxu1 }
 0x19a   :  { %v906_v22 = vpop.f32.mrf.mxu0  ;;  %v6352_v23 = vpop.f32.mrf.mxu1 }
 0x19c   :  { %v5464_v24 = vpop.f32.mrf.mxu0  ;;  %v5479_v26 = vpop.f32.mrf.mxu1 }
 0x19e   :  { %v918_v27 = vpop.f32.mrf.mxu0  ;;  %v6354_v28 = vpop.f32.mrf.mxu1 }
 0x1a0   :  { %v5474_v29 = vpop.f32.mrf.mxu0  ;;  %v5489_v30 = vpop.f32.mrf.mxu1 }
 0x1a1   :  { %v1178_v32 = vadd.f32 %v5474_v29, %v5469_v21 }
 0x1a2   :  { %v5732_v33 = vpop.eup %5731  ;;  %v1171_v36 = vpop.f32.mrf.mxu0 }
 0x1a3   :  { %v6356_v37 = vpop.f32.mrf.mxu1  ;;  %v1259_v39 = vadd.f32 %v5479_v26, %v1178_v32  ;;  %v929_v40 = vmul.f32 0.6931472, %v5732_v33  ;;  %v1172_v32 = vadd.f32 %v1171_v36, %v6352_v23 }
 0x1a4   :  { %v5484_v5 = vpop.f32.mrf.mxu0 }
 0x1a5   :  { %v5499_v41 = vpop.f32.mrf.mxu1  ;;  %v1341_v44 = vadd.f32 %v5484_v5, %v1259_v39  ;;  %v944_v45 = vadd.f32 %v929_v40, %v5793_v7 }
 0x1a6   :  { %v1332_v46 = vpop.f32.mrf.mxu0 }
 0x1a7   :  { %v6359_v47 = vpop.f32.mrf.mxu1  ;;  %v1421_v48 = vadd.f32 %v5489_v30, %v1341_v44  ;;  %v961_v35 = vsel %vm960_vm3, %v944_v45, 0.0 }
 0x1a8   :  { %v5494_v49 = vpop.f32.mrf.mxu0  ;;  %976 = vadd.xlane.f32.xlu0 %v961_v35 }
 0x1a9   :  { %v5509_v50 = vpop.f32.mrf.mxu1  ;;  %v1499_v51 = vadd.f32 %v5494_v49, %v1421_v48 }
 0x1aa   :  { %v1492_v52 = vpop.f32.mrf.mxu0 }
 0x1ab   :  { %v6361_v43 = vpop.f32.mrf.mxu1  ;;  %v1591_v54 = vadd.f32 %v5499_v41, %v1499_v51  ;;  %v1252_v41 = vadd.f32 %v6354_v28, %v1172_v32 }
 0x1ac   :  { %v5504_v55 = vpop.f32.mrf.mxu0 }
 0x1ad   :  { %v5519_v57 = vpop.f32.mrf.mxu1  ;;  %v1673_v58 = vadd.f32 %v5504_v55, %v1591_v54  ;;  %v1333_v49 = vadd.f32 %v1332_v46, %v1252_v41 }
 0x1ae   :  { %v6363_v34 = vpop.f32.mrf.mxu0 }
 0x1af   :  { %v6365_v42 = vpop.f32.mrf.mxu1  ;;  %v1754_v7 = vadd.f32 %v5509_v50, %v1673_v58  ;;  %v1415_v23 = vadd.f32 %v6356_v37, %v1333_v49 }
 0x1b0   :  { %v5514_v56 = vpop.f32.mrf.mxu0 }
 0x1b1   :  { %v5529_v0 = vpop.f32.mrf.mxu1  ;;  %v1836_v59 = vadd.f32 %v5514_v56, %v1754_v7  ;;  %v1493_v28 = vadd.f32 %v1492_v52, %v1415_v23 }
 0x1b2   :  { %v6367_v53 = vpop.f32.mrf.mxu0 }
 0x1b3   :  { %v2085_v60 = vpop.f32.mrf.mxu1  ;;  %v1916_v61 = vadd.f32 %v5519_v57, %v1836_v59  ;;  %v1581_v46 = vadd.f32 %v6359_v47, %v1493_v28 }
 0x1b4   :  { %v5524_v62 = vpop.f32.mrf.mxu0 }
 0x1b5   :  { %v5539_v63 = vpop.f32.mrf.mxu1  ;;  %v6369_v1 = vadd.f32 %v5524_v62, %v1916_v61  ;;  %v1667_v17 = vadd.f32 %v6363_v34, %v1581_v46 }
 0x1b6   :  { %v6371_v3 = vpop.f32.mrf.mxu0 }
 0x1b7   :  { %6461 = vst [vmem:[#allocation8_spill] sm:$0xff] %v6369_v1  ;;  %6462 = vst [vmem:[#allocation9_spill] sm:$0xff] %v6371_v3  ;;  %v2251_v6 = vpop.f32.mrf.mxu1 }
 0x1b8   :  { %v5534_v8 = vpop.f32.mrf.mxu0 }
 0x1b9   :  { %v6373_v9 = vpop.f32.mrf.mxu1  ;;  %v2178_v32 = vadd.f32 %v5534_v8, %v5529_v0 }
 0x1ba   :  { %v2171_v10 = vpop.f32.mrf.mxu0 }
 0x1bb   :  { %v6375_v25 = vpop.f32.mrf.mxu1  ;;  %v2172_v4 = vadd.f32 %v2171_v10, %v2085_v60  ;;  %v2259_v31 = vadd.f32 %v5539_v63, %v2178_v32  ;;  %v1747_v60 = vadd.f32 %v6361_v43, %v1667_v17 }
 0x1bc   :  { %v5544_v11 = vpop.f32.mrf.mxu0 }
 0x1bd   :  { %v5559_v12 = vpop.f32.mrf.mxu1  ;;  %v2341_v8 = vadd.f32 %v5544_v11, %v2259_v31 }
 0x1be   :  { %v6377_v13 = vpop.f32.mrf.mxu0 }
 0x1bf   :  { %v2592_v14 = vpop.f32.mrf.mxu1 }
 0x1c0   :  { %v6379_v15 = vpop.f32.mrf.mxu0 }
 0x1c1   :  { %v5569_v16 = vpop.f32.mrf.mxu1 }
 0x1c2   :  { %v6381_v18 = vpop.f32.mrf.mxu0 }
 0x1c3   :  { %v2758_v19 = vpop.f32.mrf.mxu1 }
 0x1c4   :  { %v5564_v20 = vpop.f32.mrf.mxu0 }
 0x1c5   :  { %v6383_v21 = vpop.f32.mrf.mxu1  ;;  %v2685_v37 = vadd.f32 %v5564_v20, %v5559_v12 }
 0x1c6   :  { %v2678_v22 = vpop.f32.mrf.mxu0 }
 0x1c7   :  { %v6385_v24 = vpop.f32.mrf.mxu1  ;;  %v2766_v1 = vadd.f32 %v5569_v16, %v2685_v37 }
 0x1c8   :  { %v5574_v26 = vpop.f32.mrf.mxu0 }
 0x1c9   :  { %v5589_v27 = vpop.f32.mrf.mxu1 }
 0x1ca   :  { %v6387_v29 = vpop.f32.mrf.mxu0 }
 0x1cb   :  { %v3099_v30 = vpop.f32.mrf.mxu1 }
 0x1cc   :  { %v6390_v33 = vpop.f32.mrf.mxu0 }
 0x1cd   :  { %v5599_v39 = vpop.f32.mrf.mxu1 }
 0x1ce   :  { %v6392_v40 = vpop.f32.mrf.mxu0 }
 0x1cf   :  { %6463 = vst [vmem:[#allocation10_spill] sm:$0xff] %v6392_v40  ;;  %v3265_v5 = vpop.f32.mrf.mxu1  ;;  %v2252_v40 = vadd.f32 %v2251_v6, %v2172_v4 }
 0x1d0   :  { %v5594_v44 = vpop.f32.mrf.mxu0 }
 0x1d1   :  { %v6395_v45 = vpop.f32.mrf.mxu1  ;;  %v3192_v52 = vadd.f32 %v5594_v44, %v5589_v27  ;;  %v2848_v27 = vadd.f32 %v5574_v26, %v2766_v1 }
 0x1d2   :  { %v3185_v48 = vpop.f32.mrf.mxu0 }
 0x1d3   :  { %v6397_v35 = vpop.f32.mrf.mxu1  ;;  %v3273_v12 = vadd.f32 %v5599_v39, %v3192_v52  ;;  %v2928_v1 = vadd.f32 %v6383_v21, %v2848_v27 }
 0x1d4   :  { %v5604_v50 = vpop.f32.mrf.mxu0 }
 0x1d5   :  { %v5619_v51 = vpop.f32.mrf.mxu1  ;;  %v3355_v31 = vadd.f32 %v5604_v50, %v3273_v12  ;;  %v3006_v21 = vadd.f32 %v6390_v33, %v2928_v1 }
 0x1d6   :  { %v3346_v54 = vpop.f32.mrf.mxu0 }
 0x1d7   :  { %v3606_v55 = vpop.f32.mrf.mxu1  ;;  %v3435_v50 = vadd.f32 %v6395_v45, %v3355_v31 }
 0x1d8   :  { %v6400_v36 = vpop.f32.mrf.mxu0 }
 0x1d9   :  { %6464 = vst [vmem:[#allocation11_spill] sm:$0xff] %v6400_v36  ;;  %v5629_v57 = vpop.f32.mrf.mxu1 }
 0x1da   :  { %v6402_v58 = vpop.f32.mrf.mxu0 }
 0x1db   :  { %6465 = vst [vmem:[#allocation12_spill] sm:$0xff] %v6402_v58  ;;  %v3772_v7 = vpop.f32.mrf.mxu1  ;;  %v2679_v58 = vadd.f32 %v2678_v22, %v2592_v14  ;;  %v2333_v22 = vadd.f32 %v6377_v13, %v2252_v40 }
 0x1dc   :  { %v5624_v56 = vpop.f32.mrf.mxu0 }
 0x1dd   :  { %v6404_v59 = vpop.f32.mrf.mxu1  ;;  %v3699_v0 = vadd.f32 %v5624_v56, %v5619_v51  ;;  %v2759_v10 = vadd.f32 %v2758_v19, %v2679_v58  ;;  %v2421_v51 = vadd.f32 %v6373_v9, %v2341_v8  ;;  %v6467_v56 = vld [vmem:[#allocation9_spill] sm:$0xff] }
 0x1de   :  { %v3692_v61 = vpop.f32.mrf.mxu0 }
 0x1df   :  { %v6406_v62 = vpop.f32.mrf.mxu1  ;;  %v3693_v63 = vadd.f32 %v3692_v61, %v3606_v55  ;;  %v3780_v16 = vadd.f32 %v5629_v57, %v3699_v0  ;;  %v2840_v17 = vadd.f32 %v6387_v29, %v2759_v10  ;;  %v2499_v9 = vadd.f32 %v6379_v15, %v2421_v51  ;;  %v6468_v61 = vld [vmem:[#allocation8_spill] sm:$0xff] }
 0x1e0   :  { %6466 = vst [vmem:[#allocation13_spill] sm:$0xff] %v6406_v62  ;;  %v5634_v41 = vpop.f32.mrf.mxu0  ;;  %v3186_v62 = vadd.f32 %v3185_v48, %v3099_v30  ;;  %v1828_v48 = vadd.f32 %v6367_v53, %v1747_v60  ;;  %v6470_v46 = vld [vmem:[#allocation11_spill] sm:$0xff]  ;;  %v6473_v51 = vlaneseq }
 0x1e1   :  { %v5649_v38 = vpop.f32.mrf.mxu1  ;;  %v3773_v19 = vadd.f32 %v3772_v7, %v3693_v63  ;;  %v2922_v29 = vadd.f32 %v6385_v24, %v2840_v17  ;;  %v2503_v24 = vadd.f32 %v2499_v9, %v6468_v61  ;;  %v3513_v32 = vadd.f32 %v6470_v46, %v3435_v50 }
 0x1e2   :  { %v3853_v49 = vpop.f32.mrf.mxu0  ;;  %v3266_v44 = vadd.f32 %v3265_v5, %v3186_v62  ;;  %v3862_v5 = vadd.f32 %v5634_v41, %v3780_v16  ;;  %v1910_v53 = vadd.f32 %v6365_v42, %v1828_v48  ;;  %v6469_v62 = vld [vmem:[#allocation10_spill] sm:$0xff]  ;;  %v6472_v0 = vld [vmem:[#allocation12_spill] sm:$0xff]  ;;  %v5040_v17 = vand.u32 127, %v6473_v51 }
 0x1e3   :  { %v4113_v2 = vpop.f32.mrf.mxu1  ;;  %v3000_v45 = vadd.f32 %v6469_v62, %v2922_v29 }
 0x1e4   :  { %v6410_v23 = vpop.f32.mrf.mxu0  ;;  %v3347_v13 = vadd.f32 %v3346_v54, %v3266_v44  ;;  %v3942_v28 = vadd.f32 %v6404_v59, %v3862_v5  ;;  %v1988_v15 = vadd.f32 %v6467_v56, %v1910_v53  ;;  %v6475_v53 = vld [vmem:[#allocation6_spill] sm:$0xff] }
 0x1e5   :  { %v5659_v36 = vpop.f32.mrf.mxu1  ;;  %vm5041_vm5 = vcmp.eq.s32.totalorder %v6475_v53, %v5040_v17 }
 0x1e6   :  { %v6412_v3 = vpop.f32.mrf.mxu0  ;;  %v3429_v54 = vadd.f32 %v6397_v35, %v3347_v13  ;;  %v3010_v35 = vadd.f32 %v3006_v21, %v2503_v24  ;;  %v4020_v8 = vadd.f32 %v6410_v23, %v3942_v28 }
 0x1e7   :  { %v4279_v47 = vpop.f32.mrf.mxu1 }
 0x1e8   :  { %v5654_v20 = vpop.f32.mrf.mxu0  ;;  %v3507_v60 = vadd.f32 %v6472_v0, %v3429_v54 }
 0x1e9   :  { %v5669_v34 = vpop.f32.mrf.mxu1  ;;  %v4206_v14 = vadd.f32 %v5654_v20, %v5649_v38  ;;  %v2415_v38 = vadd.f32 %v6375_v25, %v2333_v22 }
 0x1ea   :  { %v4199_v4 = vpop.f32.mrf.mxu0 }
 0x1eb   :  { %v4442_v6 = vpop.f32.mrf.mxu1  ;;  %v4200_v30 = vadd.f32 %v4199_v4, %v4113_v2  ;;  %v4287_v39 = vadd.f32 %v5659_v36, %v4206_v14  ;;  %v3854_v36 = vadd.f32 %v3853_v49, %v3773_v19  ;;  %v2493_v25 = vadd.f32 %v6381_v18, %v2415_v38  ;;  %v6471_v49 = vld [vmem:[#allocation13_spill] sm:$0xff] }
 0x1ec   :  { %v5664_v43 = vpop.f32.mrf.mxu0  ;;  %v3517_v14 = vadd.f32 %v3513_v32, %v3010_v35 }
 0x1ed   :  { %v5679_v11 = vpop.f32.mrf.mxu1  ;;  %v4280_v2 = vadd.f32 %v4279_v47, %v4200_v30  ;;  %v4369_v58 = vadd.f32 %v5664_v43, %v4287_v39  ;;  %v3936_v18 = vadd.f32 %v6471_v49, %v3854_v36  ;;  %v2502_v47 = vadd.f32 %v2493_v25, %v1988_v15 }
 0x1ee   :  { %v4360_v26 = vpop.f32.mrf.mxu0  ;;  %v4024_v31 = vadd.f32 %v4020_v8, %v3517_v14  ;;  %v5760_v15 = vmov 0  }
 0x1ef   :  { %v4620_v40 = vpop.f32.mrf.mxu1  ;;  %v4361_v42 = vadd.f32 %v4360_v26, %v4280_v2  ;;  %v4449_v52 = vadd.f32 %v5669_v34, %v4369_v58  ;;  %v3009_v63 = vadd.f32 %v3000_v45, %v2502_v47  ;;  %v4014_v44 = vadd.f32 %v6412_v3, %v3936_v18  ;;  %5714 = vset.pattern.permute.xlu0 %v5760_v15 }
 0x1f0   :  { %v5674_v55 = vpop.f32.mrf.mxu0  ;;  %v6476_v58 = vmov 0.0  }
 0x1f1   :  { %v5689_v57 = vpop.f32.mrf.mxu1  ;;  %v4443_v10 = vadd.f32 %v4442_v6, %v4361_v42  ;;  %v4527_v4 = vadd.f32 %v5674_v55, %v4449_v52  ;;  %v3516_v30 = vadd.f32 %v3507_v60, %v3009_v63  ;;  %77 = vst.msk [vmem:[#allocation2] sm:$0x1] %vm76_vm6, %v6476_v58 }
 0x1f2   :  { %v4520_v7 = vpop.f32.mrf.mxu0 }
 0x1f3   :  { %v4786_v37 = vpop.f32.mrf.mxu1  ;;  %v4521_v43 = vadd.f32 %v4520_v7, %v4443_v10  ;;  %v4023_v39 = vadd.f32 %v4014_v44, %v3516_v30  ;;  %v4531_v38 = vadd.f32 %v4527_v4, %v4024_v31  ;;  %v6477_v10 = vsub.s32 0, %v6475_v53 }
 0x1f4   :  { %v5684_v41 = vpop.f32.mrf.mxu0 }
 0x1f5   :  { %v4713_v33 = vadd.f32 %v5684_v41, %v5679_v11  ;;  %v5699_v27 = vpop.f32.mrf.mxu1  ;;  %v4530_v3 = vadd.f32 %v4521_v43, %v4023_v39 }
 0x1f6   :  { %v4706_v59 = vpop.f32.mrf.mxu0 }
 0x1f7   :  { %v4794_v12 = vadd.f32 %v5689_v57, %v4713_v33  ;;  %v4707_v20 = vadd.f32 %v4706_v59, %v4620_v40  ;;  %v4949_v6 = vpop.f32.mrf.mxu1  ;;  %v6474_v40 = vld [vmem:[#allocation7_spill] sm:$0xff] }
 0x1f8   :  { %v5694_v22 = vpop.f32.mrf.mxu0  ;;  %vm5042_vm4 = vcmp.eq.s32.totalorder %v6474_v40, %v5040_v17 }
 0x1f9   :  { %v4787_v16 = vadd.f32 %v4786_v37, %v4707_v20  ;;  %v4876_v34 = vadd.f32 %v5694_v22, %v4794_v12  ;;  %v5057_v37 = vld [vmem:[#allocation2] sm:$0x1] }
 0x1fa   :  { %v4867_v48 = vpop.f32.mrf.mxu0 }
 0x1fb   :  { %v4956_v11 = vadd.f32 %v5699_v27, %v4876_v34  ;;  %v4868_v23 = vadd.f32 %v4867_v48, %v4787_v16 }
 0x1fc   :  { %v5704_v19 = vpop.f32.mrf.mxu0 }
 0x1fd   :  { %v4950_v1 = vadd.f32 %v4949_v6, %v4868_v23  ;;  %v5034_v13 = vadd.f32 %v5704_v19, %v4956_v11 }
 0x1fe   :  { %v5027_v26 = vpop.f32.mrf.mxu0 }
 0x1ff   :  { %v5038_v5 = vadd.f32 %v5034_v13, %v4531_v38  ;;  %v5028_v2 = vadd.f32 %v5027_v26, %v4950_v1 }
 0x201   :  { %v5037_v9 = vadd.f32 %v5028_v2, %v4530_v3  ;;  %v5044_v29 = vsel %vm5042_vm4, %v5038_v5, 0.0 }
 0x202   :  { %v5046_v57 = vsel %vm121_vm0, %v5044_v29, 0.0 }
 0x203   :  { %v5043_v50 = vsel %vm5041_vm5, %v5037_v9, 0.0 }
 0x204   :  { %v5045_v55 = vsel %vm121_vm0, %v5043_v50, 0.0 }
 0x205   :  { %v5047_v36 = vadd.f32 %v5046_v57, %v5045_v55 }
 0x207   :  { %5048 = vadd.xlane.f32.xlu1 %v5047_v36 }
 0x231   :  { %v977_v25 = vpop.xlane.xlu0 %976 }
 0x232   :  { %v978_v21 = vrot.slane %v977_v25, 4 }
 0x234   :  { %v979_v54 = vadd.f32 %v978_v21, %v977_v25 }
 0x236   :  { %v980_v7 = vrot.slane %v979_v54, 2 }
 0x238   :  { %v981_v28 = vadd.f32 %v980_v7, %v979_v54 }
 0x23a   :  { %v982_v42 = vrot.slane %v981_v28, 1 }
 0x23c   :  { %v983_v56 = vadd.f32 %v982_v42, %v981_v28 }
 0x23e   :  { %5705 = vpush %v983_v56 }
 0x26f   :  { %s5706_s1 = spop %5705 }
 0x290   :  { %v5049_v61 = vpop.xlane.xlu1 %5048 }
 0x291   :  { %v5050_v24 = vrot.slane %v5049_v61, 4 }
 0x293   :  { %v5051_v62 = vadd.f32 %v5050_v24, %v5049_v61 }
 0x295   :  { %v5052_v45 = vrot.slane %v5051_v62, 2 }
 0x297   :  { %v5053_v46 = vadd.f32 %v5052_v45, %v5051_v62 }
 0x299   :  { %v5054_v32 = vrot.slane %v5053_v46, 1 }
 0x29b   :  { %v5055_v41 = vadd.f32 %v5054_v32, %v5053_v46 }
 0x29d   :  { %5707 = vpush %v5055_v41 }
 0x2ce   :  { %s5708_s12 = spop %5707 }
 0x2cf   :  { %s5058_s13 = ssub.f32 %s5706_s1, %s5708_s12 }
 0x2d1   :  { %v5059_v49 = vstv %s5058_s13 }
 0x2d2   :  { %v5060_v18 = vadd.f32 %v5059_v49, %v5057_v37 }
 0x2d4   :  { %5062 = vst.msk [vmem:[#allocation2] sm:$0x1] %vm76_vm6, %v5060_v18 }
 0x2db   :  { %v5066_v52 = vld [vmem:[#allocation2] sm:$0x1] }
 0x2dc   :  { %v5067_v33 = vmul.f32 0.125, %v5066_v52 }
 0x2de   :  { %v5068_v47 = vsub.f32 0.0, %v5067_v33 }
 0x2e0   :  { %v5069_v35 = vmul.f32 1.442695, %v5068_v47 }
 0x2e2   :  { %5733 = vpow2.f32 %v5069_v35 }
 0x2ef   :  { %v5734_v0 = vpop.eup %5733 }
 0x2f0   :  { %v5071_v60 = vsub.f32 1.0, %v5734_v0 }
 0x2f2   :  { %v5072_v59 = vmul.f32 %v5071_v60, %v5071_v60 }
 0x2f4   :  { %v5073_v8 = vmul.f32 %v5072_v59, %v5067_v33 }
 0x2f6   :  { %v5078_v12 = vrot.slane %v5073_v8, %v6477_v10 }
 0x2f8   :  { %5080 = vperm.xlu0 %5714, %v5078_v12  }
 0x373   :  { %v5081_v20 = vpop.permute.xlu0 %5080 }
 0x374   :  { %5083 = vst [vmem:[#allocation3] sm:$0xff] %v5081_v20 }
 0x375   :  { %5746 = shalt.err (!%p5743_p4)
}
 0x376   :  { %5093 = dma.vmem_to_hbm [thread:$0]  %s5091_s15, 128, %s6452_s2, [#allocation4]  }
 0x377   :  { %5755 = dma.done.wait [#allocation4], 128  }
 0x378   :  { %5756 = vsyncadd [#allocation4], 4294967168 }
 0x379   :  { %5097 = vsyncpa [#allocation4], 1 }

</bundles_post_ra>
